<compile_context>
chip_gen: v7x
topology: tpu7x:2x2x1
jax: 0.10.0
libtpu: 0.0.40
codegen_flags: <defaults>
</compile_context>

<pallas_src>
import functools
import math

import jax
import jax.numpy as jnp
from jax.experimental import pallas as pl
from jax.experimental.pallas import tpu as pltpu

HIDDEN = 64
OUT_DIM = 256
CIN_PAD = 8                              # layer-1 contraction padded 3 -> 8
INV_SQRT2 = 1.0 / math.sqrt(2.0)
_GELU_C = 0.7978845608028654             # sqrt(2 / pi)
_GELU_K = 0.044715

_MAX_ROWS_PER_STEP = 8192                # rows (BB * TN) of fused MLP per grid step
_VMEM_LIMIT_BYTES = 48 * 1024 * 1024     # < 64 MiB physical on v7x, raises v5e's 16 MiB default
_MIN_ROWS_FOR_SPLIT = 2048               # keep per-step overhead amortized when splitting for 2 TCs


def _round_up(x, m):
    return (x + m - 1) // m * m


def _device_kind():
    try:
        return jax.devices()[0].device_kind.lower()
    except Exception:
        return ""


def _vpu_has_bf16():
    # v6e / v7x have a packed-bf16 VPU + bf16 EUP; v5e (and older) do not.
    k = _device_kind()
    return ("v6" in k) or ("v7" in k) or ("7x" in k)


def _multi_tensorcore():
    # v7x has 2 TensorCores per chip.
    k = _device_kind()
    return ("v7" in k) or ("7x" in k)


def _pick_tiles(B, N, max_rows):
    """Choose (BB, TN): batches folded per step and the (8-aligned) point tile."""
    n_tiles = max(1, -(-N // max_rows))          # ceil(N / max_rows)
    tn = _round_up(-(-N // n_tiles), 8)          # balanced tile, sublane-aligned
    bb = min(B, max(1, max_rows // tn))
    while B % bb:                                # BB must divide B
        bb -= 1
    # v7x: if everything collapsed to a single grid block, split the point axis
    # so both TensorCores get work (partials are combined by the wrapper max).
    if (_multi_tensorcore() and B // bb == 1 and N <= tn
            and bb * tn >= 2 * _MIN_ROWS_FOR_SPLIT):
        tn = _round_up((tn + 1) // 2, 8)
    return bb, tn


def pointnet_kernel(x_ref, w1_ref, b1_ref, w2_ref, b2_ref, o_ref, *,
                    gelu_dtype, mxu_dtype, approximate_gelu):
    """Fused Linear(8->64) -> GELU -> Linear(64->256) -> running max over points.

    Grid: (B // BB, n_par, n_inner).  The last axis is the reduction (max) axis:
    the output block stays resident across it.  b2 is added once, after the max.
    """
    n_idx = pl.program_id(2)

    bb, tn, cin_p = x_ref.shape
    rows = bb * tn
    xf = x_ref[...].reshape(rows, cin_p)                       # (rows, 8)

    # ---- Layer 1 on the MXU (K padded to 8 with zeros in the wrapper; exact).
    h = jnp.dot(xf, w1_ref[...], preferred_element_type=jnp.float32)
    h = h + b1_ref[...]                                        # (rows, 64)

    # ---- GELU.  tanh form routes the transcendental to the EUP slot; bf16
    # VPU math on v6e/v7x, f32 elsewhere.
    h = h.astype(gelu_dtype)
    if approximate_gelu:
        inner = _GELU_C * (h + _GELU_K * (h * h * h))
        g = 0.5 * h * (1.0 + jnp.tanh(inner))
    else:
        g = 0.5 * h * (1.0 + jax.lax.erf(h * INV_SQRT2))       # exact nn.GELU()

    # ---- Layer 2 on the MXU: bf16 operands (w2 pre-cast in wrapper), f32 acc.
    y = jnp.dot(g.astype(mxu_dtype), w2_ref[...],
                preferred_element_type=jnp.float32)            # (rows, 256)

    # ---- Per-batch max over this tile's points.  NOTE: no b2 here.
    tile_max = jnp.max(y.reshape(bb, tn, OUT_DIM), axis=1)     # (BB, 256)

    @pl.when(n_idx == 0)
    def _():
        o_ref[0] = tile_max                                    # direct write, no -inf init

    @pl.when(n_idx > 0)
    def _():
        o_ref[0] = jnp.maximum(o_ref[0], tile_max)

    @pl.when(n_idx == pl.num_programs(2) - 1)
    def _():
        o_ref[0] = o_ref[0] + b2_ref[...]                      # fold bias after the max (exact)


def pointnet_forward(x, w1, b1, w2, b2, *, use_bf16=True, approximate_gelu=True,
                     vpu_bf16=None, max_rows=_MAX_ROWS_PER_STEP):
    """x: [B, N, Cin] -> [B, 256].  w1: [Cin, 64], w2: [64, 256], biases 1-D or (1, C)."""
    B, N, Cin = x.shape
    assert Cin <= CIN_PAD
    assert w1.shape == (Cin, HIDDEN) and w2.shape == (HIDDEN, OUT_DIM)
    b1 = jnp.asarray(b1, jnp.float32).reshape(1, HIDDEN)
    b2 = jnp.asarray(b2, jnp.float32).reshape(1, OUT_DIM)

    bb, tn = _pick_tiles(B, N, max_rows)

    # Pad N to a tile multiple by replicating the last point (max is unaffected
    # by duplicates) and pad the channel dim 3 -> 8 with zeros (exact no-op for
    # the matmul).  This keeps tiles aligned and avoids degenerate giant tiles.
    x_p = x.astype(jnp.float32)
    n_pad = (-N) % tn
    if n_pad:
        x_p = jnp.pad(x_p, ((0, 0), (0, n_pad), (0, 0)), mode="edge")
    if Cin < CIN_PAD:
        x_p = jnp.pad(x_p, ((0, 0), (0, 0), (0, CIN_PAD - Cin)))
    Np = N + n_pad
    n_tiles = Np // tn

    # Guarantee >=2 blocks on a parallel axis when cheaply possible (v7x has 2
    # TensorCores).  Partial point-maxes are combined with a tiny wrapper max.
    # TODO(synk): for odd n_tiles with B == BB the second v7x core stays idle.
    n_par = 2 if (B // bb < 2 and n_tiles >= 2 and n_tiles % 2 == 0) else 1
    n_inner = n_tiles // n_par

    w1_p = jnp.pad(w1.astype(jnp.float32), ((0, CIN_PAD - Cin), (0, 0)))
    mxu_dtype = jnp.bfloat16 if use_bf16 else jnp.float32
    w2_c = w2.astype(mxu_dtype)                    # pre-cast once (no per-step convert)

    if vpu_bf16 is None:
        vpu_bf16 = use_bf16 and _vpu_has_bf16()    # bf16 VPU math on v6e/v7x only
    gelu_dtype = jnp.bfloat16 if (vpu_bf16 and use_bf16) else jnp.float32
    if not approximate_gelu:
        gelu_dtype = jnp.float32                   # exact-erf path stays f32

    grid = (B // bb, n_par, n_inner)

    flops = 2 * B * Np * (CIN_PAD * HIDDEN + HIDDEN * OUT_DIM)
    transcendentals = B * Np * HIDDEN
    bytes_accessed = (4 * (x_p.size + w1_p.size + b1.size + b2.size
                           + n_par * B * OUT_DIM)
                      + w2_c.dtype.itemsize * w2_c.size)

    kernel = functools.partial(pointnet_kernel,
                               gelu_dtype=gelu_dtype,
                               mxu_dtype=mxu_dtype,
                               approximate_gelu=approximate_gelu)

    out = pl.pallas_call(
        kernel,
        out_shape=jax.ShapeDtypeStruct((n_par, B, OUT_DIM), jnp.float32),
        grid_spec=pltpu.PrefetchScalarGridSpec(
            num_scalar_prefetch=0,
            grid=grid,
            in_specs=[
                pl.BlockSpec((bb, tn, CIN_PAD),
                             lambda b, p, n: (b, p * n_inner + n, 0)),       # x slab
                pl.BlockSpec((CIN_PAD, HIDDEN), lambda b, p, n: (0, 0)),     # W1 (padded)
                pl.BlockSpec((1, HIDDEN), lambda b, p, n: (0, 0)),           # b1
                pl.BlockSpec((HIDDEN, OUT_DIM), lambda b, p, n: (0, 0)),     # W2 (bf16)
                pl.BlockSpec((1, OUT_DIM), lambda b, p, n: (0, 0)),          # b2
            ],
            out_specs=pl.BlockSpec((1, bb, OUT_DIM), lambda b, p, n: (p, b, 0)),
        ),
        compiler_params=pltpu.CompilerParams(
            dimension_semantics=("parallel", "parallel", "arbitrary"),
            vmem_limit_bytes=_VMEM_LIMIT_BYTES,
        ),
        cost_estimate=pl.CostEstimate(
            flops=flops,
            transcendentals=transcendentals,
            bytes_accessed=bytes_accessed,
        ),
    )(x_p, w1_p, b1, w2_c, b2)

    return out[0] if n_par == 1 else jnp.max(out, axis=0)


def _reference(x, w1, b1, w2, b2):
    h = x @ w1 + b1.reshape(-1)
    h = 0.5 * h * (1.0 + jax.lax.erf(h * INV_SQRT2))
    y = h @ w2 + b2.reshape(-1)
    return jnp.max(y, axis=1)


if __name__ == "__main__":
    key = jax.random.PRNGKey(0)
    k_x, k_w1, k_b1, k_w2, k_b2, k_x2, k_x3 = jax.random.split(key, 7)

    # Module uses trunc_normal(std=0.02) weights and zero biases; we use small
    # nonzero biases here so the bias handling (b2 folded after the max) is
    # actually exercised.
    B, N, Cin = 2, 256, 3
    x = jax.random.normal(k_x, (B, N, Cin), dtype=jnp.float32)
    w1 = (0.02 * jax.random.normal(k_w1, (Cin, HIDDEN))).astype(jnp.float32)
    b1 = (0.01 * jax.random.normal(k_b1, (HIDDEN,))).astype(jnp.float32)
    w2 = (0.02 * jax.random.normal(k_w2, (HIDDEN, OUT_DIM))).astype(jnp.float32)
    b2 = (0.01 * jax.random.normal(k_b2, (OUT_DIM,))).astype(jnp.float32)

    ref = _reference(x, w1, b1, w2, b2)

    # 1) Full-f32 MXU + exact erf GELU: tight tolerance vs the f32 reference.
    out_f32 = jax.block_until_ready(
        pointnet_forward(x, w1, b1, w2, b2, use_bf16=False, approximate_gelu=False))
    assert out_f32.shape == (B, OUT_DIM)
    assert jnp.allclose(out_f32, ref, atol=5e-4, rtol=1e-3), "f32/exact path mismatch"

    # 2) Default fast path: bf16 MXU operands, tanh GELU (EUP), bf16 VPU math
    #    where the chip supports it.
    out = jax.block_until_ready(pointnet_forward(x, w1, b1, w2, b2))
    assert out.shape == (B, OUT_DIM)
    assert jnp.allclose(out, ref, atol=1e-3, rtol=1e-2), "default path mismatch"

    # 3) Multi-tile running max + ragged N (edge-padding): N=2000, small tiles.
    x2 = jax.random.normal(k_x2, (2, 2000, Cin), dtype=jnp.float32)
    ref2 = _reference(x2, w1, b1, w2, b2)
    out2 = jax.block_until_ready(pointnet_forward(x2, w1, b1, w2, b2, max_rows=128))
    assert jnp.allclose(out2, ref2, atol=1e-3, rtol=1e-2), "multi-tile path mismatch"

    # 4) Partial-max split over the point axis (n_par=2) with B=1.
    x3 = jax.random.normal(k_x3, (1, 1024, Cin), dtype=jnp.float32)
    ref3 = _reference(x3, w1, b1, w2, b2)
    out3 = jax.block_until_ready(pointnet_forward(x3, w1, b1, w2, b2, max_rows=256))
    assert jnp.allclose(out3, ref3, atol=1e-3, rtol=1e-2), "n_par path mismatch"

    print("KERNEL_OK")
</pallas_src>

<mosaic_0001>
module attributes {stable_mosaic.version = 11 : i64} {
  func.func @pointnet_kernel(%arg0: i32, %arg1: i32, %arg2: i32, %arg3: memref<2x256x8xf32, #tpu.memory_space<vmem>>, %arg4: memref<8x64xf32, #tpu.memory_space<vmem>>, %arg5: memref<1x64xf32, #tpu.memory_space<vmem>>, %arg6: memref<64x256xf32, #tpu.memory_space<vmem>>, %arg7: memref<1x256xf32, #tpu.memory_space<vmem>>, %arg8: memref<1x2x256xf32, #tpu.memory_space<vmem>>) attributes {dimension_semantics = [#tpu.dimension_semantics<parallel>, #tpu.dimension_semantics<parallel>, #tpu.dimension_semantics<arbitrary>], iteration_bounds = array<i64: 1, 1, 1>, scalar_prefetch = 0 : i64, scratch_operands = 0 : i64, tpu.core_type = #tpu.core_type<tc>, window_params = [{transform_indices = @transform_0, window_bounds = array<i64: 2, 256, 8>}, {pipeline_mode = #tpu.pipeline_mode<synchronous>, transform_indices = @transform_1, window_bounds = array<i64: 8, 64>}, {pipeline_mode = #tpu.pipeline_mode<synchronous>, transform_indices = @transform_2, window_bounds = array<i64: 1, 64>}, {pipeline_mode = #tpu.pipeline_mode<synchronous>, transform_indices = @transform_3, window_bounds = array<i64: 64, 256>}, {pipeline_mode = #tpu.pipeline_mode<synchronous>, transform_indices = @transform_4, window_bounds = array<i64: 1, 256>}, {transform_indices = @transform_5, window_bounds = array<i64: 1, 2, 256>}]} {
    %c0 = arith.constant 0 : index
    %c0_0 = arith.constant 0 : index
    %c0_1 = arith.constant 0 : index
    %0 = vector.load %arg3[%c0, %c0_0, %c0_1] : memref<2x256x8xf32, #tpu.memory_space<vmem>>, vector<2x256x8xf32>
    %1 = vector.shape_cast %0 : vector<2x256x8xf32> to vector<512x8xf32>
    %c0_2 = arith.constant 0 : index
    %c0_3 = arith.constant 0 : index
    %2 = vector.load %arg4[%c0_2, %c0_3] : memref<8x64xf32, #tpu.memory_space<vmem>>, vector<8x64xf32>
    %cst = arith.constant dense<0.000000e+00> : vector<512x64xf32>
    %3 = tpu.matmul %1, %2, %cst {dimension_numbers = #tpu.dot_dimension_numbers<[1], [0], [0], [1], [0, 0, 1, 1], [], []>} : vector<512x8xf32>, vector<8x64xf32>, vector<512x64xf32> -> vector<512x64xf32>
    %c0_4 = arith.constant 0 : index
    %c0_5 = arith.constant 0 : index
    %4 = vector.load %arg5[%c0_4, %c0_5] : memref<1x64xf32, #tpu.memory_space<vmem>>, vector<1x64xf32>
    %5 = vector.broadcast %4 : vector<1x64xf32> to vector<512x64xf32>
    %6 = arith.addf %3, %5 : vector<512x64xf32>
    %cst_6 = arith.constant 5.000000e-01 : f32
    %7 = vector.broadcast %cst_6 : f32 to vector<512x64xf32>
    %8 = arith.mulf %7, %6 : vector<512x64xf32>
    %cst_7 = arith.constant 0.707106769 : f32
    %9 = vector.broadcast %cst_7 : f32 to vector<512x64xf32>
    %10 = arith.mulf %6, %9 : vector<512x64xf32>
    %11 = math.erf %10 : vector<512x64xf32>
    %cst_8 = arith.constant 1.000000e+00 : f32
    %12 = vector.broadcast %cst_8 : f32 to vector<512x64xf32>
    %13 = arith.addf %12, %11 : vector<512x64xf32>
    %14 = arith.mulf %8, %13 : vector<512x64xf32>
    %c0_9 = arith.constant 0 : index
    %c0_10 = arith.constant 0 : index
    %15 = vector.load %arg6[%c0_9, %c0_10] : memref<64x256xf32, #tpu.memory_space<vmem>>, vector<64x256xf32>
    %cst_11 = arith.constant dense<0.000000e+00> : vector<512x256xf32>
    %16 = tpu.matmul %14, %15, %cst_11 {dimension_numbers = #tpu.dot_dimension_numbers<[1], [0], [0], [1], [0, 0, 1, 1], [], []>} : vector<512x64xf32>, vector<64x256xf32>, vector<512x256xf32> -> vector<512x256xf32>
    %17 = vector.shape_cast %16 : vector<512x256xf32> to vector<2x256x256xf32>
    %cst_12 = arith.constant dense<0xFF800000> : vector<2x256xf32>
    %18 = vector.multi_reduction <maximumf>, %17, %cst_12 [1] : vector<2x256x256xf32> to vector<2x256xf32>
    %c0_i32 = arith.constant 0 : i32
    %19 = arith.cmpi eq, %arg2, %c0_i32 : i32
    %20 = arith.extui %19 : i1 to i32
    %c0_i32_13 = arith.constant 0 : i32
    %21 = arith.cmpi ne, %20, %c0_i32_13 : i32
    scf.if %21 {
      %c0_18 = arith.constant 0 : index
      %c0_19 = arith.constant 0 : index
      %c0_20 = arith.constant 0 : index
      %28 = vector.load %arg8[%c0_18, %c0_19, %c0_20] : memref<1x2x256xf32, #tpu.memory_space<vmem>>, vector<1x2x256xf32>
      %29 = vector.shape_cast %28 : vector<1x2x256xf32> to vector<2x256xf32>
      %30 = vector.shape_cast %18 : vector<2x256xf32> to vector<1x2x256xf32>
      tpu.vector_store %arg8[%c0_18, %c0_19, %c0_20], %30 {strides = array<i32>} : memref<1x2x256xf32, #tpu.memory_space<vmem>>, vector<1x2x256xf32>,
    } else {
    }
    %c0_i32_14 = arith.constant 0 : i32
    %22 = arith.cmpi sgt, %arg2, %c0_i32_14 : i32
    %23 = arith.extui %22 : i1 to i32
    %c0_i32_15 = arith.constant 0 : i32
    %24 = arith.cmpi ne, %23, %c0_i32_15 : i32
    scf.if %24 {
      %c0_18 = arith.constant 0 : index
      %c0_19 = arith.constant 0 : index
      %c0_20 = arith.constant 0 : index
      %28 = vector.load %arg8[%c0_18, %c0_19, %c0_20] : memref<1x2x256xf32, #tpu.memory_space<vmem>>, vector<1x2x256xf32>
      %29 = vector.shape_cast %28 : vector<1x2x256xf32> to vector<2x256xf32>
      %30 = arith.maximumf %29, %18 : vector<2x256xf32>
      %c0_21 = arith.constant 0 : index
      %c0_22 = arith.constant 0 : index
      %c0_23 = arith.constant 0 : index
      %31 = vector.load %arg8[%c0_21, %c0_22, %c0_23] : memref<1x2x256xf32, #tpu.memory_space<vmem>>, vector<1x2x256xf32>
      %32 = vector.shape_cast %31 : vector<1x2x256xf32> to vector<2x256xf32>
      %33 = vector.shape_cast %30 : vector<2x256xf32> to vector<1x2x256xf32>
      tpu.vector_store %arg8[%c0_21, %c0_22, %c0_23], %33 {strides = array<i32>} : memref<1x2x256xf32, #tpu.memory_space<vmem>>, vector<1x2x256xf32>,
    } else {
    }
    %c0_i32_16 = arith.constant 0 : i32
    %25 = arith.cmpi eq, %arg2, %c0_i32_16 : i32
    %26 = arith.extui %25 : i1 to i32
    %c0_i32_17 = arith.constant 0 : i32
    %27 = arith.cmpi ne, %26, %c0_i32_17 : i32
    scf.if %27 {
      %c0_18 = arith.constant 0 : index
      %c0_19 = arith.constant 0 : index
      %c0_20 = arith.constant 0 : index
      %28 = vector.load %arg8[%c0_18, %c0_19, %c0_20] : memref<1x2x256xf32, #tpu.memory_space<vmem>>, vector<1x2x256xf32>
      %29 = vector.shape_cast %28 : vector<1x2x256xf32> to vector<2x256xf32>
      %c0_21 = arith.constant 0 : index
      %c0_22 = arith.constant 0 : index
      %30 = vector.load %arg7[%c0_21, %c0_22] : memref<1x256xf32, #tpu.memory_space<vmem>>, vector<1x256xf32>
      %31 = vector.broadcast %30 : vector<1x256xf32> to vector<2x256xf32>
      %32 = arith.addf %29, %31 : vector<2x256xf32>
      %c0_23 = arith.constant 0 : index
      %c0_24 = arith.constant 0 : index
      %c0_25 = arith.constant 0 : index
      %33 = vector.load %arg8[%c0_23, %c0_24, %c0_25] : memref<1x2x256xf32, #tpu.memory_space<vmem>>, vector<1x2x256xf32>
      %34 = vector.shape_cast %33 : vector<1x2x256xf32> to vector<2x256xf32>
      %35 = vector.shape_cast %32 : vector<2x256xf32> to vector<1x2x256xf32>
      tpu.vector_store %arg8[%c0_23, %c0_24, %c0_25], %35 {strides = array<i32>} : memref<1x2x256xf32, #tpu.memory_space<vmem>>, vector<1x2x256xf32>,
    } else {
    }
    return
  }
  func.func @transform_0(%arg0: i32, %arg1: i32, %arg2: i32) -> (i32, i32, i32) {
    %c1_i32 = arith.constant 1 : i32
    %0 = arith.muli %arg1, %c1_i32 : i32
    %1 = arith.addi %0, %arg2 : i32
    %c0_i32 = arith.constant 0 : i32
    %c0_i32_0 = arith.constant 0 : i32
    return %arg0, %1, %c0_i32 : i32, i32, i32
  }
  func.func @transform_1(%arg0: i32, %arg1: i32, %arg2: i32) -> (i32, i32) {
    %c0_i32 = arith.constant 0 : i32
    %c0_i32_0 = arith.constant 0 : i32
    %c0_i32_1 = arith.constant 0 : i32
    return %c0_i32, %c0_i32_0 : i32, i32
  }
  func.func @transform_2(%arg0: i32, %arg1: i32, %arg2: i32) -> (i32, i32) {
    %c0_i32 = arith.constant 0 : i32
    %c0_i32_0 = arith.constant 0 : i32
    %c0_i32_1 = arith.constant 0 : i32
    return %c0_i32, %c0_i32_0 : i32, i32
  }
  func.func @transform_3(%arg0: i32, %arg1: i32, %arg2: i32) -> (i32, i32) {
    %c0_i32 = arith.constant 0 : i32
    %c0_i32_0 = arith.constant 0 : i32
    %c0_i32_1 = arith.constant 0 : i32
    return %c0_i32, %c0_i32_0 : i32, i32
  }
  func.func @transform_4(%arg0: i32, %arg1: i32, %arg2: i32) -> (i32, i32) {
    %c0_i32 = arith.constant 0 : i32
    %c0_i32_0 = arith.constant 0 : i32
    %c0_i32_1 = arith.constant 0 : i32
    return %c0_i32, %c0_i32_0 : i32, i32
  }
  func.func @transform_5(%arg0: i32, %arg1: i32, %arg2: i32) -> (i32, i32, i32) {
    %c0_i32 = arith.constant 0 : i32
    %c0_i32_0 = arith.constant 0 : i32
    return %arg1, %arg0, %c0_i32 : i32, i32, i32
  }
}

</mosaic_0001>

<bundles_post_ra>
// kernel: tpu_custom_call.1
= control target key start
LH: loop header
LB: loop body
LE: loop exit
PB: predicated region body
PF: predicated region fallthrough
CT: control target
= control target key end

     0   :  { %vm115_vm0 = vcmask 64512   ;;  %s3194_s0 = inlined_call_operand.vmem [shape: f32[2,256,8], index: 0, kind: input, shape index: {}]   ;;  %s3195_s1 = inlined_call_operand.vmem [shape: f32[8,64], index: 1, kind: input, shape index: {}]   ;;  %s3196_s2 = inlined_call_operand.vmem [shape: f32[1,64], index: 2, kind: input, shape index: {}]   ;;  %s3197_s3 = inlined_call_operand.vmem [shape: f32[64,256], index: 3, kind: input, shape index: {}]   ;;  %s3198_s4 = inlined_call_operand.vmem [shape: f32[1,256], index: 4, kind: input, shape index: {}]   ;;  %s3199_s5 = inlined_call_operand.hbm [shape: f32[1,2,256], index: 5, kind: output, shape index: {}]  }
   0x1   :  { %v107_v0 = vld [vmem:[%s3195_s1] sm:$0xff]  ;;  %v44_v2 = vld [vmem:[%s3194_s0 + $0x8] sm:$0xff]  ;;  %v45_v3 = vld [vmem:[%s3194_s0 + $0x10] sm:$0xff] }
   0x2   :  { %v43_v1 = vld [vmem:[%s3194_s0] sm:$0xff]  ;;  %2138 = vmatprep.subr.mxu0 %v107_v0  ;;  %v46_v4 = vld [vmem:[%s3194_s0 + $0x18] sm:$0xff]  ;;  %v48_v6 = vld [vmem:[%s3194_s0 + $0x28] sm:$0xff] }
   0x3   :  { %2140 = vmatprep.mubr.msk.f32.mxu0 %vm115_vm0, %v43_v1  ;;  %2139 = vmatpush3.msra.mxu0 %v107_v0  ;;  %v47_v5 = vld [vmem:[%s3194_s0 + $0x20] sm:$0xff]  ;;  %v49_v7 = vld [vmem:[%s3194_s0 + $0x30] sm:$0xff]  ;;  %v50_v8 = vld [vmem:[%s3194_s0 + $0x38] sm:$0xff] }
   0x4   :  { %2141 = vmatmul.mubr.msk.f32.vlgmr.msra.gmra.mrb[0].mxu0 %vm115_vm0, %v44_v2  ;;  %v51_v9 = vld [vmem:[%s3194_s0 + $0x40] sm:$0xff]  ;;  %v52_v10 = vld [vmem:[%s3194_s0 + $0x48] sm:$0xff]  ;;  %v53_v11 = vld [vmem:[%s3194_s0 + $0x50] sm:$0xff] }
   0x5   :  { %2143 = vmatprep.mubr.msk.f32.mxu0 %vm115_vm0, %v45_v3  ;;  %v54_v12 = vld [vmem:[%s3194_s0 + $0x58] sm:$0xff]  ;;  %v55_v13 = vld [vmem:[%s3194_s0 + $0x60] sm:$0xff] }
   0x8   :  { %2144 = vmatmul.mubr.msk.f32.gmra.mrb[2].mxu0 %vm115_vm0, %v46_v4 }
   0x9   :  { %2146 = vmatprep.mubr.msk.f32.mxu0 %vm115_vm0, %v47_v5 }
   0xc   :  { %2147 = vmatmul.mubr.msk.f32.gmra.mrb[4].mxu0 %vm115_vm0, %v48_v6 }
   0xd   :  { %2149 = vmatprep.mubr.msk.f32.mxu0 %vm115_vm0, %v49_v7 }
  0x10   :  { %2150 = vmatmul.mubr.msk.f32.gmra.mrb[6].mxu0 %vm115_vm0, %v50_v8 }
  0x11   :  { %2152 = vmatprep.mubr.msk.f32.mxu0 %vm115_vm0, %v51_v9 }
  0x14   :  { %2153 = vmatmul.mubr.msk.f32.gmra.mrb[8].mxu0 %vm115_vm0, %v52_v10 }
  0x15   :  { %2155 = vmatprep.mubr.msk.f32.mxu0 %vm115_vm0, %v53_v11 }
  0x16   :  { %10 = vsyncpa [#allocation3], 0  ;;  %v56_v14 = vld [vmem:[%s3194_s0 + $0x68] sm:$0xff]  ;;  %v57_v15 = vld [vmem:[%s3194_s0 + $0x70] sm:$0xff]  ;;  %vm1029_vm1 = vcmask 523264   ;;  %vm1848_vm2 = vcmask 1041409  }
  0x17   :  { %v58_v16 = vld [vmem:[%s3194_s0 + $0x78] sm:$0xff]  ;;  %v59_v17 = vld [vmem:[%s3194_s0 + $0x80] sm:$0xff]  ;;  %v60_v18 = vld [vmem:[%s3194_s0 + $0x88] sm:$0xff]  ;;  %vm1850_vm3 = vcmask 1043459   ;;  %vm1852_vm4 = vcmask 1045509   ;;  %vm1854_vm5 = vcmask 1047559  }
  0x18   :  { %2156 = vmatmul.mubr.msk.f32.gmra.mrb[10].mxu0 %vm115_vm0, %v54_v12  ;;  %v61_v19 = vld [vmem:[%s3194_s0 + $0x90] sm:$0xff]  ;;  %v62_v20 = vld [vmem:[%s3194_s0 + $0x98] sm:$0xff]  ;;  %v63_v21 = vld [vmem:[%s3194_s0 + $0xa0] sm:$0xff]  ;;  %s2418_s26 = smov [#allocation2]  }
  0x19   :  { %2158 = vmatprep.mubr.msk.f32.mxu0 %vm115_vm0, %v55_v13  ;;  %v64_v22 = vld [vmem:[%s3194_s0 + $0xa8] sm:$0xff]  ;;  %v65_v23 = vld [vmem:[%s3194_s0 + $0xb0] sm:$0xff]  ;;  %v66_v24 = vld [vmem:[%s3194_s0 + $0xb8] sm:$0xff]  ;;  %s1930_s27 = sshll.u32 %s2418_s26, 4  ;;  %s1931_s27 = int_to_ptr.vmem [resolvable:$true] %s1930_s27 }
  0x1a   :  { %v67_v25 = vld [vmem:[%s3194_s0 + $0xc0] sm:$0xff]  ;;  %v68_v26 = vld [vmem:[%s3194_s0 + $0xc8] sm:$0xff]  ;;  %v69_v27 = vld [vmem:[%s3194_s0 + $0xd0] sm:$0xff]  ;;  %p2397_p1 = scmp.lt.s32.totalorder %s1931_s27, %s1931_s27 }
  0x1b   :  { %v70_v28 = vld [vmem:[%s3194_s0 + $0xd8] sm:$0xff]  ;;  %v71_v29 = vld [vmem:[%s3194_s0 + $0xe0] sm:$0xff]  ;;  %v72_v30 = vld [vmem:[%s3194_s0 + $0xe8] sm:$0xff] }
  0x1c   :  { %2159 = vmatmul.mubr.msk.f32.gmra.mrb[12].mxu0 %vm115_vm0, %v56_v14  ;;  %v73_v31 = vld [vmem:[%s3194_s0 + $0xf0] sm:$0xff]  ;;  %v74_v32 = vld [vmem:[%s3194_s0 + $0xf8] sm:$0xff]  ;;  %v75_v33 = vld [vmem:[%s3194_s0 + $0x100] sm:$0xff] }
  0x1d   :  { %2161 = vmatprep.mubr.msk.f32.mxu0 %vm115_vm0, %v57_v15  ;;  %v76_v34 = vld [vmem:[%s3194_s0 + $0x108] sm:$0xff]  ;;  %v77_v35 = vld [vmem:[%s3194_s0 + $0x110] sm:$0xff]  ;;  %v78_v36 = vld [vmem:[%s3194_s0 + $0x118] sm:$0xff] }
  0x1e   :  { %v79_v37 = vld [vmem:[%s3194_s0 + $0x120] sm:$0xff]  ;;  %v80_v38 = vld [vmem:[%s3194_s0 + $0x128] sm:$0xff]  ;;  %v81_v39 = vld [vmem:[%s3194_s0 + $0x130] sm:$0xff] }
  0x1f   :  { %v82_v40 = vld [vmem:[%s3194_s0 + $0x138] sm:$0xff]  ;;  %v83_v41 = vld [vmem:[%s3194_s0 + $0x140] sm:$0xff]  ;;  %v84_v42 = vld [vmem:[%s3194_s0 + $0x148] sm:$0xff] }
  0x20   :  { %2162 = vmatmul.mubr.msk.f32.gmra.mrb[14].mxu0 %vm115_vm0, %v58_v16  ;;  %v85_v43 = vld [vmem:[%s3194_s0 + $0x150] sm:$0xff]  ;;  %v86_v44 = vld [vmem:[%s3194_s0 + $0x158] sm:$0xff]  ;;  %v87_v45 = vld [vmem:[%s3194_s0 + $0x160] sm:$0xff]  ;;  %v2416_v16 = vmov 0.0  }
  0x21   :  { %2164 = vmatprep.mubr.msk.f32.mxu0 %vm115_vm0, %v59_v17  ;;  %v88_v46 = vld [vmem:[%s3194_s0 + $0x168] sm:$0xff]  ;;  %v1016_v48 = vld [vmem:[%s3197_s3 + $0x18] sm:$0xff]  ;;  %v89_v49 = vld [vmem:[%s3194_s0 + $0x170] sm:$0xff]  ;;  %1388 = vmatprep.mubr.f32.mxu1 %v2416_v16 }
  0x22   :  { %v1014_v47 = vld [vmem:[%s3197_s3 + $0x8] sm:$0xff]  ;;  %v1013_v51 = vld [vmem:[%s3197_s3] sm:$0xff]  ;;  %v1015_v52 = vld [vmem:[%s3197_s3 + $0x10] sm:$0xff] }
  0x23   :  { %v2236_v50 = vpack.c.bf16 %v1016_v48, %v1014_v47  ;;  %v2238_v53 = vpack.c.bf16 %v1015_v52, %v1013_v51  ;;  %v90_v54 = vld [vmem:[%s3194_s0 + $0x178] sm:$0xff]  ;;  %v1018_v55 = vld [vmem:[%s3197_s3 + $0x28] sm:$0xff]  ;;  %v91_v57 = vld [vmem:[%s3194_s0 + $0x180] sm:$0xff] }
  0x24   :  { %2165 = vmatmul.mubr.msk.f32.gmra.mrb[16].mxu0 %vm115_vm0, %v60_v18  ;;  %v1020_v56 = vld [vmem:[%s3197_s3 + $0x38] sm:$0xff]  ;;  %v1017_v59 = vld [vmem:[%s3197_s3 + $0x20] sm:$0xff]  ;;  %v1019_v60 = vld [vmem:[%s3197_s3 + $0x30] sm:$0xff] }
  0x25   :  { %2167 = vmatprep.mubr.msk.f32.mxu0 %vm115_vm0, %v61_v19  ;;  %2237 = vmatprep.subr.bf16.mxu0 %v2236_v50  ;;  %v2240_v58 = vpack.c.bf16 %v1020_v56, %v1018_v55  ;;  %v2242_v61 = vpack.c.bf16 %v1019_v60, %v1017_v59  ;;  %v92_v62 = vld [vmem:[%s3194_s0 + $0x188] sm:$0xff]  ;;  %v1024_v0 = vld [vmem:[%s3197_s3 + $0x58] sm:$0xff]  ;;  %v93_v1 = vld [vmem:[%s3194_s0 + $0x190] sm:$0xff] }
  0x26   :  { %2239 = vmatpush1.bf16.msra.mxu0 %v2238_v53  ;;  %2252 = vmatprep.subr.bf16.mxu1 %v2236_v50  ;;  %v1022_v63 = vld [vmem:[%s3197_s3 + $0x48] sm:$0xff]  ;;  %v1021_v3 = vld [vmem:[%s3197_s3 + $0x40] sm:$0xff]  ;;  %v1023_v4 = vld [vmem:[%s3197_s3 + $0x50] sm:$0xff] }
  0x27   :  { %2256 = vmatpush1.bf16.msra.mxu1 %v2238_v53  ;;  %2241 = vmatprep.subr.bf16.mxu0 %v2240_v58  ;;  %v2244_v2 = vpack.c.bf16 %v1024_v0, %v1022_v63  ;;  %v2246_v5 = vpack.c.bf16 %v1023_v4, %v1021_v3  ;;  %v94_v6 = vld [vmem:[%s3194_s0 + $0x198] sm:$0xff]  ;;  %v1026_v7 = vld [vmem:[%s3197_s3 + $0x68] sm:$0xff]  ;;  %v95_v9 = vld [vmem:[%s3194_s0 + $0x1a0] sm:$0xff] }
  0x28   :  { %2168 = vmatmul.mubr.msk.f32.gmra.mrb[18].mxu0 %vm115_vm0, %v62_v20  ;;  %2253 = vmatprep.subr.bf16.mxu1 %v2240_v58  ;;  %v1028_v8 = vld [vmem:[%s3197_s3 + $0x78] sm:$0xff]  ;;  %v1025_v11 = vld [vmem:[%s3197_s3 + $0x60] sm:$0xff]  ;;  %v1027_v12 = vld [vmem:[%s3197_s3 + $0x70] sm:$0xff] }
  0x29   :  { %2170 = vmatprep.mubr.msk.f32.mxu0 %vm115_vm0, %v63_v21  ;;  %v2248_v10 = vpack.c.bf16 %v1028_v8, %v1026_v7  ;;  %v2250_v13 = vpack.c.bf16 %v1027_v12, %v1025_v11  ;;  %v96_v14 = vld [vmem:[%s3194_s0 + $0x1a8] sm:$0xff]  ;;  %v97_v15 = vld [vmem:[%s3194_s0 + $0x1b0] sm:$0xff]  ;;  %v98_v17 = vld [vmem:[%s3194_s0 + $0x1b8] sm:$0xff] }
  0x2a   :  { %2243 = vmatpush1.bf16.msra.mxu0 %v2242_v61  ;;  %v99_v18 = vld [vmem:[%s3194_s0 + $0x1c0] sm:$0xff]  ;;  %v100_v19 = vld [vmem:[%s3194_s0 + $0x1c8] sm:$0xff]  ;;  %v101_v20 = vld [vmem:[%s3194_s0 + $0x1d0] sm:$0xff] }
  0x2b   :  { %2257 = vmatpush1.bf16.msra.mxu1 %v2242_v61  ;;  %2245 = vmatprep.subr.bf16.mxu0 %v2244_v2  ;;  %v102_v21 = vld [vmem:[%s3194_s0 + $0x1d8] sm:$0xff] }
  0x2c   :  { %2171 = vmatmul.mubr.msk.f32.gmra.mrb[20].mxu0 %vm115_vm0, %v64_v22  ;;  %2254 = vmatprep.subr.bf16.mxu1 %v2244_v2  ;;  %v103_v22 = vld [vmem:[%s3194_s0 + $0x1e0] sm:$0xff] }
  0x2d   :  { %2173 = vmatprep.mubr.msk.f32.mxu0 %vm115_vm0, %v65_v23  ;;  %v104_v23 = vld [vmem:[%s3194_s0 + $0x1e8] sm:$0xff] }
  0x2e   :  { %2247 = vmatpush1.bf16.msra.mxu0 %v2246_v5 }
  0x2f   :  { %2258 = vmatpush1.bf16.msra.mxu1 %v2246_v5  ;;  %2249 = vmatprep.subr.bf16.mxu0 %v2248_v10 }
  0x30   :  { %2174 = vmatmul.mubr.msk.f32.gmra.mrb[22].mxu0 %vm115_vm0, %v66_v24  ;;  %2255 = vmatprep.subr.bf16.mxu1 %v2248_v10  ;;  %v105_v24 = vld [vmem:[%s3194_s0 + $0x1f0] sm:$0xff] }
  0x31   :  { %2176 = vmatprep.mubr.msk.f32.mxu0 %vm115_vm0, %v67_v25  ;;  %v106_v25 = vld [vmem:[%s3194_s0 + $0x1f8] sm:$0xff] }
  0x32   :  { %2251 = vmatpush1.bf16.msra.mxu0 %v2250_v13 }
  0x33   :  { %2259 = vmatpush1.bf16.msra.mxu1 %v2250_v13 }
  0x34   :  { %2177 = vmatmul.mubr.msk.f32.gmra.mrb[24].mxu0 %vm115_vm0, %v68_v26  ;;  %v2761_v26 = vld [vmem:[%s3196_s2] ss:$0 sm:$0xff] }
  0x35   :  { %2179 = vmatprep.mubr.msk.f32.mxu0 %vm115_vm0, %v69_v27 }
  0x38   :  { %2180 = vmatmul.mubr.msk.f32.gmra.mrb[26].mxu0 %vm115_vm0, %v70_v28 }
  0x39   :  { %2182 = vmatprep.mubr.msk.f32.mxu0 %vm115_vm0, %v71_v29 }
  0x3c   :  { %2183 = vmatmul.mubr.msk.f32.gmra.mrb[28].mxu0 %vm115_vm0, %v72_v30 }
  0x3d   :  { %2185 = vmatprep.mubr.msk.f32.mxu0 %vm115_vm0, %v73_v31 }
  0x40   :  { %2186 = vmatmul.mubr.msk.f32.gmra.mrb[30].mxu0 %vm115_vm0, %v74_v32 }
  0x41   :  { %2188 = vmatprep.mubr.msk.f32.mxu0 %vm115_vm0, %v75_v33 }
  0x44   :  { %2189 = vmatmul.mubr.msk.f32.gmra.mrb[32].mxu0 %vm115_vm0, %v76_v34 }
  0x45   :  { %2191 = vmatprep.mubr.msk.f32.mxu0 %vm115_vm0, %v77_v35 }
  0x48   :  { %2192 = vmatmul.mubr.msk.f32.gmra.mrb[34].mxu0 %vm115_vm0, %v78_v36 }
  0x49   :  { %2194 = vmatprep.mubr.msk.f32.mxu0 %vm115_vm0, %v79_v37 }
  0x4c   :  { %2195 = vmatmul.mubr.msk.f32.gmra.mrb[36].mxu0 %vm115_vm0, %v80_v38 }
  0x4d   :  { %2197 = vmatprep.mubr.msk.f32.mxu0 %vm115_vm0, %v81_v39 }
  0x50   :  { %2198 = vmatmul.mubr.msk.f32.gmra.mrb[38].mxu0 %vm115_vm0, %v82_v40 }
  0x51   :  { %2200 = vmatprep.mubr.msk.f32.mxu0 %vm115_vm0, %v83_v41 }
  0x54   :  { %2201 = vmatmul.mubr.msk.f32.gmra.mrb[40].mxu0 %vm115_vm0, %v84_v42 }
  0x55   :  { %2203 = vmatprep.mubr.msk.f32.mxu0 %vm115_vm0, %v85_v43 }
  0x58   :  { %2204 = vmatmul.mubr.msk.f32.gmra.mrb[42].mxu0 %vm115_vm0, %v86_v44 }
  0x59   :  { %2206 = vmatprep.mubr.msk.f32.mxu0 %vm115_vm0, %v87_v45 }
  0x5c   :  { %2207 = vmatmul.mubr.msk.f32.gmra.mrb[44].mxu0 %vm115_vm0, %v88_v46 }
  0x5d   :  { %2209 = vmatprep.mubr.msk.f32.mxu0 %vm115_vm0, %v89_v49 }
  0x60   :  { %2210 = vmatmul.mubr.msk.f32.gmra.mrb[46].mxu0 %vm115_vm0, %v90_v54 }
  0x61   :  { %2212 = vmatprep.mubr.msk.f32.mxu0 %vm115_vm0, %v91_v57 }
  0x64   :  { %2213 = vmatmul.mubr.msk.f32.gmra.mrb[48].mxu0 %vm115_vm0, %v92_v62 }
  0x65   :  { %2215 = vmatprep.mubr.msk.f32.mxu0 %vm115_vm0, %v93_v1 }
  0x68   :  { %2216 = vmatmul.mubr.msk.f32.gmra.mrb[50].mxu0 %vm115_vm0, %v94_v6 }
  0x69   :  { %2218 = vmatprep.mubr.msk.f32.mxu0 %vm115_vm0, %v95_v9 }
  0x6c   :  { %2219 = vmatmul.mubr.msk.f32.gmra.mrb[52].mxu0 %vm115_vm0, %v96_v14 }
  0x6d   :  { %2221 = vmatprep.mubr.msk.f32.mxu0 %vm115_vm0, %v97_v15 }
  0x70   :  { %2222 = vmatmul.mubr.msk.f32.gmra.mrb[54].mxu0 %vm115_vm0, %v98_v17 }
  0x71   :  { %2224 = vmatprep.mubr.msk.f32.mxu0 %vm115_vm0, %v99_v18 }
  0x74   :  { %2225 = vmatmul.mubr.msk.f32.gmra.mrb[56].mxu0 %vm115_vm0, %v100_v19 }
  0x75   :  { %2227 = vmatprep.mubr.msk.f32.mxu0 %vm115_vm0, %v101_v20 }
  0x78   :  { %2228 = vmatmul.mubr.msk.f32.gmra.mrb[58].mxu0 %vm115_vm0, %v102_v21 }
  0x79   :  { %2230 = vmatprep.mubr.msk.f32.mxu0 %vm115_vm0, %v103_v22 }
  0x7c   :  { %2231 = vmatmul.mubr.msk.f32.gmra.mrb[60].mxu0 %vm115_vm0, %v104_v23 }
  0x7d   :  { %2233 = vmatprep.mubr.msk.f32.mxu0 %vm115_vm0, %v105_v24 }
  0x80   :  { %2234 = vmatmul.mubr.msk.f32.gmra.mrb[62].mxu0 %vm115_vm0, %v106_v25 }
  0x81   :  { %1286 = vmatprep.mubr.f32.mxu0 %v2416_v16 }
  0xd7   :  { %v2142_v27 = vpop.f32.mrb[0].mxu0 }
  0xd8   :  { %v380_v28 = vadd.f32 %v2142_v27, %v2761_v26  ;;  %v374_v29 = vpop.f32.mrb[1].mxu0 }
  0xd9   :  { %v375_v30 = vadd.f32 %v2761_v26, %v374_v29 }
  0xda   :  { %v758_v31 = vmul.f32 0.70710677, %v380_v28  ;;  %v694_v58 = vmul.f32 0.5, %v380_v28 }
  0xdb   :  { %v757_v32 = vmul.f32 0.70710677, %v375_v30  ;;  %v2145_v33 = vpop.f32.mrb[2].mxu0  ;;  %v693_v49 = vmul.f32 0.5, %v375_v30 }
  0xdc   :  { %2263 = verf.f32 %v758_v31  ;;  %v384_v34 = vpop.f32.mrb[3].mxu0  ;;  %v390_v35 = vadd.f32 %v2145_v33, %v2761_v26 }
  0xdd   :  { %2265 = verf.f32 %v757_v32  ;;  %v385_v36 = vadd.f32 %v2761_v26, %v384_v34 }
  0xde   :  { %v760_v40 = vmul.f32 0.70710677, %v390_v35  ;;  %v696_v10 = vmul.f32 0.5, %v390_v35 }
  0xdf   :  { %v759_v37 = vmul.f32 0.70710677, %v385_v36  ;;  %v2148_v38 = vpop.f32.mrb[4].mxu0  ;;  %v695_v2 = vmul.f32 0.5, %v385_v36 }
  0xe0   :  { %v394_v39 = vpop.f32.mrb[5].mxu0  ;;  %v400_v44 = vadd.f32 %v2148_v38, %v2761_v26 }
  0xe1   :  { %2267 = verf.f32 %v759_v37  ;;  %v395_v41 = vadd.f32 %v2761_v26, %v394_v39 }
  0xe2   :  { %2269 = verf.f32 %v760_v40  ;;  %v762_v52 = vmul.f32 0.70710677, %v400_v44  ;;  %v698_v31 = vmul.f32 0.5, %v400_v44 }
  0xe3   :  { %v2151_v42 = vpop.f32.mrb[6].mxu0  ;;  %v761_v45 = vmul.f32 0.70710677, %v395_v41  ;;  %v697_v20 = vmul.f32 0.5, %v395_v41 }
  0xe4   :  { %v404_v43 = vpop.f32.mrb[7].mxu0  ;;  %v2774_v60 = vadd.f32 %v2151_v42, %v2761_v26 }
  0xe5   :  { %2271 = verf.f32 %v761_v45  ;;  %v2770_v53 = vadd.f32 %v2761_v26, %v404_v43 }
  0xe6   :  { %v2264_v46 = vpop.eup %2263  ;;  %2273 = verf.f32 %v762_v52  ;;  %v764_v4 = vmul.f32 0.70710677, %v2774_v60 }
  0xe7   :  { %v2266_v47 = vpop.eup %2265  ;;  %v2154_v48 = vpop.f32.mrb[8].mxu0  ;;  %v886_v54 = vadd.f32 1.0, %v2264_v46  ;;  %v763_v61 = vmul.f32 0.70710677, %v2770_v53  ;;  %v699_v42 = vmul.f32 0.5, %v2770_v53 }
  0xe8   :  { %v885_v50 = vadd.f32 1.0, %v2266_v47  ;;  %v414_v51 = vpop.f32.mrb[9].mxu0  ;;  %v2792_v12 = vadd.f32 %v2154_v48, %v2761_v26 }
  0xe9   :  { %v950_v62 = vmul.f32 %v886_v54, %v694_v58  ;;  %2275 = verf.f32 %v763_v61  ;;  %v2783_v5 = vadd.f32 %v2761_v26, %v414_v51  ;;  %v700_v54 = vmul.f32 0.5, %v2774_v60 }
  0xea   :  { %v949_v55 = vmul.f32 %v885_v50, %v693_v49  ;;  %2277 = verf.f32 %v764_v4  ;;  %v766_v23 = vmul.f32 0.70710677, %v2792_v12 }
  0xeb   :  { %v2268_v56 = vpop.eup %2267  ;;  %v2157_v57 = vpop.f32.mrb[10].mxu0  ;;  %v765_v13 = vmul.f32 0.70710677, %v2783_v5 }
  0xec   :  { %v424_v59 = vpop.f32.mrb[11].mxu0  ;;  %2009 = vmatmul.mubr.msk.f32.vlgmr.msra.gmra.mrb[64].mxu0 %vm1029_vm1, %v949_v55  ;;  %v887_v63 = vadd.f32 1.0, %v2268_v56  ;;  %v2270_v0 = vpop.eup %2269  ;;  %v2807_v32 = vadd.f32 %v2157_v57, %v2761_v26 }
  0xed   :  { %1292 = vmatprep.mubr.f32.mxu0 %v2416_v16  ;;  %v888_v6 = vadd.f32 1.0, %v2270_v0  ;;  %v2797_v18 = vadd.f32 %v2761_v26, %v424_v59  ;;  %2279 = verf.f32 %v765_v13 }
  0xee   :  { %v951_v7 = vmul.f32 %v887_v63, %v695_v2  ;;  %v768_v43 = vmul.f32 0.70710677, %v2807_v32 }
  0xef   :  { %v2778_v1 = vpop.f32.mrb[12].mxu0  ;;  %v2272_v8 = vpop.eup %2271  ;;  %v952_v14 = vmul.f32 %v888_v6, %v696_v10  ;;  %v767_v29 = vmul.f32 0.70710677, %v2797_v18 }
  0xf0   :  { %v434_v3 = vpop.f32.mrb[13].mxu0  ;;  %2010 = vmatmul.mubr.msk.f32.gmra.mrb[66].mxu0 %vm1029_vm1, %v950_v62  ;;  %v889_v15 = vadd.f32 1.0, %v2272_v8  ;;  %v2274_v17 = vpop.eup %2273  ;;  %v2831_v51 = vadd.f32 %v2778_v1, %v2761_v26 }
  0xf1   :  { %1298 = vmatprep.mubr.f32.mxu0 %v2416_v16  ;;  %v890_v24 = vadd.f32 1.0, %v2274_v17  ;;  %v2819_v44 = vadd.f32 %v2761_v26, %v434_v3  ;;  %v701_v3 = vmul.f32 0.5, %v2783_v5 }
  0xf2   :  { %v953_v25 = vmul.f32 %v889_v15, %v697_v20  ;;  %v770_v60 = vmul.f32 0.70710677, %v2831_v51 }
  0xf3   :  { %v2786_v9 = vpop.f32.mrb[14].mxu0  ;;  %v2276_v28 = vpop.eup %2275  ;;  %v954_v36 = vmul.f32 %v890_v24, %v698_v31  ;;  %v769_v55 = vmul.f32 0.70710677, %v2819_v44 }
  0xf4   :  { %v2788_v11 = vpop.f32.mrb[15].mxu0  ;;  %2011 = vmatmul.mubr.msk.f32.gmra.mrb[68].mxu0 %vm1029_vm1, %v951_v7  ;;  %v891_v37 = vadd.f32 1.0, %v2276_v28  ;;  %v2278_v39 = vpop.eup %2277  ;;  %v2860_v20 = vadd.f32 %v2786_v9, %v2761_v26 }
  0xf5   :  { %1304 = vmatprep.mubr.f32.mxu0 %v2416_v16  ;;  %v892_v48 = vadd.f32 1.0, %v2278_v39  ;;  %v2846_v4 = vadd.f32 %v2761_v26, %v2788_v11  ;;  %v702_v11 = vmul.f32 0.5, %v2792_v12 }
  0xf6   :  { %v955_v49 = vmul.f32 %v891_v37, %v699_v42  ;;  %v772_v37 = vmul.f32 0.70710677, %v2860_v20 }
  0xf7   :  { %v2166_v19 = vpop.f32.mrb[16].mxu0  ;;  %v2280_v50 = vpop.eup %2279  ;;  %v956_v61 = vmul.f32 %v892_v48, %v700_v54 }
  0xf8   :  { %v460_v21 = vadd.f32 %v2166_v19, %v2761_v26  ;;  %v2800_v22 = vpop.f32.mrb[17].mxu0  ;;  %2012 = vmatmul.mubr.msk.f32.gmra.mrb[70].mxu0 %vm1029_vm1, %v952_v14  ;;  %v893_v62 = vadd.f32 1.0, %v2280_v50  ;;  %v704_v50 = vmul.f32 0.5, %v2807_v32 }
  0xf9   :  { %1310 = vmatprep.mubr.f32.mxu0 %v2416_v16 }
  0xfa   :  { %v774_v27 = vmul.f32 0.70710677, %v460_v21  ;;  %v710_v0 = vmul.f32 0.5, %v460_v21  ;;  %v957_v15 = vmul.f32 %v893_v62, %v701_v3  ;;  %v771_v21 = vmul.f32 0.70710677, %v2846_v4 }
  0xfb   :  { %v2169_v30 = vpop.f32.mrb[18].mxu0 }
  0xfc   :  { %2281 = verf.f32 %v774_v27  ;;  %v2810_v33 = vadd.f32 %v2169_v30, %v2761_v26  ;;  %v464_v34 = vpop.f32.mrb[19].mxu0  ;;  %2013 = vmatmul.mubr.msk.f32.gmra.mrb[72].mxu0 %vm1029_vm1, %v953_v25 }
  0xfd   :  { %2283 = verf.f32 %v766_v23  ;;  %v465_v35 = vadd.f32 %v2761_v26, %v464_v34  ;;  %1316 = vmatprep.mubr.f32.mxu0 %v2416_v16 }
  0xfe   :  { %v776_v38 = vmul.f32 0.70710677, %v2810_v33  ;;  %2285 = verf.f32 %v767_v29  ;;  %v712_v39 = vmul.f32 0.5, %v2810_v33 }
  0xff   :  { %v775_v40 = vmul.f32 0.70710677, %v465_v35  ;;  %v2172_v41 = vpop.f32.mrb[20].mxu0  ;;  %v711_v23 = vmul.f32 0.5, %v465_v35  ;;  %v703_v35 = vmul.f32 0.5, %v2797_v18 }
 0x100   :  { %2287 = verf.f32 %v776_v38  ;;  %v474_v45 = vpop.f32.mrb[21].mxu0  ;;  %2014 = vmatmul.mubr.msk.f32.gmra.mrb[74].mxu0 %vm1029_vm1, %v954_v36  ;;  %v2823_v46 = vadd.f32 %v2172_v41, %v2761_v26  ;;  %v2876_v38 = vadd.f32 %v2761_v26, %v2800_v22 }
 0x101   :  { %2289 = verf.f32 %v775_v40  ;;  %v2826_v47 = vadd.f32 %v2761_v26, %v474_v45  ;;  %1322 = vmatprep.mubr.f32.mxu0 %v2416_v16 }
 0x102   :  { %2291 = verf.f32 %v768_v43  ;;  %v778_v57 = vmul.f32 0.70710677, %v2823_v46 }
 0x103   :  { %v777_v52 = vmul.f32 0.70710677, %v2826_v47  ;;  %v2175_v53 = vpop.f32.mrb[22].mxu0 }
 0x104   :  { %v484_v56 = vpop.f32.mrb[23].mxu0  ;;  %2015 = vmatmul.mubr.msk.f32.gmra.mrb[76].mxu0 %vm1029_vm1, %v955_v49  ;;  %v2850_v10 = vadd.f32 %v2175_v53, %v2761_v26  ;;  %v713_v53 = vmul.f32 0.5, %v2826_v47 }
 0x105   :  { %2293 = verf.f32 %v777_v52  ;;  %v2839_v58 = vadd.f32 %v2761_v26, %v484_v56  ;;  %1328 = vmatprep.mubr.f32.mxu0 %v2416_v16  ;;  %v773_v52 = vmul.f32 0.70710677, %v2876_v38 }
 0x106   :  { %v2282_v59 = vpop.eup %2281  ;;  %2295 = verf.f32 %v769_v55  ;;  %v780_v12 = vmul.f32 0.70710677, %v2850_v10 }
 0x107   :  { %v2284_v63 = vpop.eup %2283  ;;  %v902_v1 = vadd.f32 1.0, %v2282_v59  ;;  %v2178_v2 = vpop.f32.mrb[24].mxu0  ;;  %2297 = verf.f32 %v778_v57  ;;  %v779_v13 = vmul.f32 0.70710677, %v2839_v58 }
 0x108   :  { %v494_v6 = vpop.f32.mrb[25].mxu0  ;;  %2016 = vmatmul.mubr.msk.f32.gmra.mrb[78].mxu0 %vm1029_vm1, %v956_v61  ;;  %v2286_v7 = vpop.eup %2285  ;;  %v894_v5 = vadd.f32 1.0, %v2284_v63  ;;  %2299 = verf.f32 %v770_v60  ;;  %v2882_v41 = vadd.f32 %v2178_v2, %v2761_v26  ;;  %v705_v60 = vmul.f32 0.5, %v2819_v44 }
 0x109   :  { %v966_v8 = vmul.f32 %v902_v1, %v710_v0  ;;  %1334 = vmatprep.mubr.f32.mxu0 %v2416_v16  ;;  %2301 = verf.f32 %v779_v13  ;;  %v2867_v27 = vadd.f32 %v2761_v26, %v494_v6  ;;  %v895_v29 = vadd.f32 1.0, %v2286_v7 }
 0x10a   :  { %v2288_v14 = vpop.eup %2287  ;;  %v958_v9 = vmul.f32 %v894_v5, %v702_v11  ;;  %2303 = verf.f32 %v771_v21  ;;  %v782_v56 = vmul.f32 0.70710677, %v2882_v41  ;;  %v714_v0 = vmul.f32 0.5, %v2823_v46 }
 0x10b   :  { %v2290_v17 = vpop.eup %2289  ;;  %2026 = vmatmul.mubr.msk.f32.vlgmr.msra.gmra.mrb[0].mxu1 %vm1029_vm1, %v966_v8  ;;  %v2856_v19 = vpop.f32.mrb[26].mxu0  ;;  %v904_v30 = vadd.f32 1.0, %v2288_v14  ;;  %2305 = verf.f32 %v780_v12  ;;  %v781_v18 = vmul.f32 0.70710677, %v2867_v27  ;;  %v959_v43 = vmul.f32 %v895_v29, %v703_v35 }
 0x10c   :  { %v903_v24 = vadd.f32 1.0, %v2290_v17  ;;  %2017 = vmatmul.mubr.msk.f32.gmra.mrb[80].mxu0 %vm1029_vm1, %v957_v15  ;;  %v504_v25 = vpop.f32.mrb[27].mxu0  ;;  %1394 = vmatprep.mubr.f32.mxu1 %v2416_v16  ;;  %v2292_v28 = vpop.eup %2291  ;;  %2307 = verf.f32 %v772_v37  ;;  %v2912_v2 = vadd.f32 %v2856_v19, %v2761_v26  ;;  %v706_v5 = vmul.f32 0.5, %v2831_v51 }
 0x10d   :  { %1340 = vmatprep.mubr.f32.mxu0 %v2416_v16  ;;  %v896_v22 = vadd.f32 1.0, %v2292_v28  ;;  %v968_v45 = vmul.f32 %v904_v30, %v712_v39  ;;  %2309 = verf.f32 %v781_v18  ;;  %v2898_v57 = vadd.f32 %v2761_v26, %v504_v25 }
 0x10e   :  { %v967_v31 = vmul.f32 %v903_v24, %v711_v23  ;;  %2311 = verf.f32 %v773_v52  ;;  %v715_v15 = vmul.f32 0.5, %v2839_v58  ;;  %v784_v11 = vmul.f32 0.70710677, %v2912_v2 }
 0x10f   :  { %v2294_v34 = vpop.eup %2293  ;;  %v2871_v36 = vpop.f32.mrb[28].mxu0  ;;  %v960_v32 = vmul.f32 %v896_v22, %v704_v50  ;;  %2313 = verf.f32 %v782_v56  ;;  %v783_v3 = vmul.f32 0.70710677, %v2898_v57  ;;  %v707_v28 = vmul.f32 0.5, %v2846_v4 }
 0x110   :  { %2018 = vmatmul.mubr.msk.f32.gmra.mrb[82].mxu0 %vm1029_vm1, %v958_v9  ;;  %2027 = vmatmul.mubr.msk.f32.gmra.mrb[2].mxu1 %vm1029_vm1, %v967_v31  ;;  %v514_v40 = vpop.f32.mrb[29].mxu0  ;;  %v2296_v42 = vpop.eup %2295  ;;  %v905_v33 = vadd.f32 1.0, %v2294_v34  ;;  %v716_v9 = vmul.f32 0.5, %v2850_v10  ;;  %v2941_v31 = vadd.f32 %v2871_v36, %v2761_v26 }
 0x111   :  { %1346 = vmatprep.mubr.f32.mxu0 %v2416_v16  ;;  %1400 = vmatprep.mubr.f32.mxu1 %v2416_v16  ;;  %v2298_v48 = vpop.eup %2297  ;;  %v897_v59 = vadd.f32 1.0, %v2296_v42  ;;  %2315 = verf.f32 %v783_v3  ;;  %v2927_v19 = vadd.f32 %v2761_v26, %v514_v40  ;;  %v708_v40 = vmul.f32 0.5, %v2860_v20 }
 0x112   :  { %v2300_v55 = vpop.eup %2299  ;;  %v906_v47 = vadd.f32 1.0, %v2298_v48  ;;  %v969_v61 = vmul.f32 %v905_v33, %v713_v53  ;;  %2317 = verf.f32 %v784_v11  ;;  %v717_v42 = vmul.f32 0.5, %v2867_v27 }
 0x113   :  { %v2887_v49 = vpop.f32.mrb[30].mxu0  ;;  %v2302_v62 = vpop.eup %2301  ;;  %v898_v6 = vadd.f32 1.0, %v2300_v55  ;;  %v961_v46 = vmul.f32 %v897_v59, %v705_v60  ;;  %v785_v34 = vmul.f32 0.70710677, %v2927_v19  ;;  %v718_v27 = vmul.f32 0.5, %v2882_v41 }
 0x114   :  { %2019 = vmatmul.mubr.msk.f32.gmra.mrb[84].mxu0 %vm1029_vm1, %v959_v43  ;;  %2028 = vmatmul.mubr.msk.f32.gmra.mrb[4].mxu1 %vm1029_vm1, %v968_v45  ;;  %v2894_v54 = vpop.f32.mrb[31].mxu0  ;;  %v2304_v44 = vpop.eup %2303  ;;  %v970_v7 = vmul.f32 %v906_v47, %v714_v0  ;;  %v907_v8 = vadd.f32 1.0, %v2302_v62  ;;  %v786_v43 = vmul.f32 0.70710677, %v2941_v31  ;;  %v709_v53 = vmul.f32 0.5, %v2876_v38 }
 0x115   :  { %1352 = vmatprep.mubr.f32.mxu0 %v2416_v16  ;;  %1406 = vmatprep.mubr.f32.mxu1 %v2416_v16  ;;  %v2306_v13 = vpop.eup %2305  ;;  %v962_v51 = vmul.f32 %v898_v6, %v706_v5  ;;  %v899_v23 = vadd.f32 1.0, %v2304_v44  ;;  %2319 = verf.f32 %v785_v34  ;;  %v2957_v45 = vadd.f32 %v2761_v26, %v2894_v54 }
 0x116   :  { %v2308_v21 = vpop.eup %2307  ;;  %v908_v58 = vadd.f32 1.0, %v2306_v13  ;;  %v971_v24 = vmul.f32 %v907_v8, %v715_v15  ;;  %2321 = verf.f32 %v786_v43  ;;  %v530_v55 = vadd.f32 %v2887_v49, %v2761_v26 }
 0x117   :  { %v2902_v63 = vpop.f32.mrb[32].mxu0  ;;  %v2310_v25 = vpop.eup %2309  ;;  %v900_v30 = vadd.f32 1.0, %v2308_v21  ;;  %v963_v10 = vmul.f32 %v899_v23, %v707_v28  ;;  %v787_v56 = vmul.f32 0.70710677, %v2957_v45  ;;  %v719_v38 = vmul.f32 0.5, %v2898_v57 }
 0x118   :  { %2020 = vmatmul.mubr.msk.f32.gmra.mrb[86].mxu0 %vm1029_vm1, %v960_v32  ;;  %2029 = vmatmul.mubr.msk.f32.gmra.mrb[6].mxu1 %vm1029_vm1, %v969_v61  ;;  %v2908_v1 = vpop.f32.mrb[33].mxu0  ;;  %v2312_v4 = vpop.eup %2311  ;;  %v972_v35 = vmul.f32 %v908_v58, %v716_v9  ;;  %v909_v37 = vadd.f32 1.0, %v2310_v25  ;;  %v788_v49 = vmul.f32 0.70710677, %v530_v55  ;;  %v720_v0 = vmul.f32 0.5, %v2912_v2 }
 0x119   :  { %1358 = vmatprep.mubr.f32.mxu0 %v2416_v16  ;;  %1412 = vmatprep.mubr.f32.mxu1 %v2416_v16  ;;  %v2314_v39 = vpop.eup %2313  ;;  %v964_v22 = vmul.f32 %v900_v30, %v708_v40  ;;  %v901_v20 = vadd.f32 1.0, %v2312_v4  ;;  %2323 = verf.f32 %v787_v56  ;;  %v535_v60 = vadd.f32 %v2761_v26, %v2908_v1 }
 0x11a   :  { %v910_v33 = vadd.f32 1.0, %v2314_v39  ;;  %v973_v48 = vmul.f32 %v909_v37, %v717_v42  ;;  %2325 = verf.f32 %v788_v49  ;;  %v721_v13 = vmul.f32 0.5, %v2927_v19 }
 0x11b   :  { %v2917_v14 = vpop.f32.mrb[34].mxu0  ;;  %v2316_v50 = vpop.eup %2315  ;;  %v965_v41 = vmul.f32 %v901_v20, %v709_v53  ;;  %v789_v8 = vmul.f32 0.70710677, %v535_v60  ;;  %v723_v30 = vmul.f32 0.5, %v2957_v45 }
 0x11c   :  { %2021 = vmatmul.mubr.msk.f32.gmra.mrb[88].mxu0 %vm1029_vm1, %v961_v46  ;;  %2030 = vmatmul.mubr.msk.f32.gmra.mrb[8].mxu1 %vm1029_vm1, %v970_v7  ;;  %v2923_v17 = vpop.f32.mrb[35].mxu0  ;;  %v974_v32 = vmul.f32 %v910_v33, %v718_v27  ;;  %v911_v59 = vadd.f32 1.0, %v2316_v50  ;;  %v2318_v47 = vpop.eup %2317  ;;  %v540_v7 = vadd.f32 %v2902_v63, %v2761_v26  ;;  %v722_v63 = vmul.f32 0.5, %v2941_v31 }
 0x11d   :  { %1364 = vmatprep.mubr.f32.mxu0 %v2416_v16  ;;  %1418 = vmatprep.mubr.f32.mxu1 %v2416_v16  ;;  %v912_v57 = vadd.f32 1.0, %v2318_v47  ;;  %2327 = verf.f32 %v789_v8  ;;  %v550_v28 = vadd.f32 %v2917_v14, %v2761_v26  ;;  %v724_v14 = vmul.f32 0.5, %v530_v55 }
 0x11e   :  { %v975_v3 = vmul.f32 %v911_v59, %v719_v38  ;;  %v790_v21 = vmul.f32 0.70710677, %v540_v7  ;;  %v725_v27 = vmul.f32 0.5, %v535_v60 }
 0x11f   :  { %v2931_v12 = vpop.f32.mrb[36].mxu0  ;;  %v2320_v44 = vpop.eup %2319  ;;  %v976_v1 = vmul.f32 %v912_v57, %v720_v0 }
 0x120   :  { %2022 = vmatmul.mubr.msk.f32.gmra.mrb[90].mxu0 %vm1029_vm1, %v962_v51  ;;  %2031 = vmatmul.mubr.msk.f32.gmra.mrb[10].mxu1 %vm1029_vm1, %v971_v24  ;;  %v2937_v29 = vpop.f32.mrb[37].mxu0  ;;  %v913_v2 = vadd.f32 1.0, %v2320_v44  ;;  %v2322_v5 = vpop.eup %2321  ;;  %v545_v51 = vadd.f32 %v2761_v26, %v2923_v17  ;;  %2329 = verf.f32 %v790_v21  ;;  %v560_v45 = vadd.f32 %v2931_v12, %v2761_v26 }
 0x121   :  { %1370 = vmatprep.mubr.f32.mxu0 %v2416_v16  ;;  %1424 = vmatprep.mubr.f32.mxu1 %v2416_v16  ;;  %v914_v23 = vadd.f32 1.0, %v2322_v5  ;;  %v555_v37 = vadd.f32 %v2761_v26, %v2937_v29  ;;  %v726_v12 = vmul.f32 0.5, %v540_v7 }
 0x122   :  { %v977_v58 = vmul.f32 %v913_v2, %v721_v13  ;;  %v791_v9 = vmul.f32 0.70710677, %v545_v51  ;;  %v794_v55 = vmul.f32 0.70710677, %v560_v45  ;;  %v727_v0 = vmul.f32 0.5, %v545_v51 }
 0x123   :  { %v2947_v18 = vpop.f32.mrb[38].mxu0  ;;  %v2324_v19 = vpop.eup %2323  ;;  %v978_v17 = vmul.f32 %v914_v23, %v722_v63  ;;  %v793_v20 = vmul.f32 0.70710677, %v555_v37 }
 0x124   :  { %2023 = vmatmul.mubr.msk.f32.gmra.mrb[92].mxu0 %vm1029_vm1, %v963_v10  ;;  %2032 = vmatmul.mubr.msk.f32.gmra.mrb[12].mxu1 %vm1029_vm1, %v972_v35  ;;  %v2952_v36 = vpop.f32.mrb[39].mxu0  ;;  %v915_v31 = vadd.f32 1.0, %v2324_v19  ;;  %v2326_v34 = vpop.eup %2325  ;;  %v792_v35 = vmul.f32 0.70710677, %v550_v28  ;;  %2331 = verf.f32 %v791_v9  ;;  %v570_v49 = vadd.f32 %v2947_v18, %v2761_v26 }
 0x125   :  { %1376 = vmatprep.mubr.f32.mxu0 %v2416_v16  ;;  %1430 = vmatprep.mubr.f32.mxu1 %v2416_v16  ;;  %v916_v39 = vadd.f32 1.0, %v2326_v34  ;;  %v565_v56 = vadd.f32 %v2761_v26, %v2952_v36  ;;  %v728_v18 = vmul.f32 0.5, %v550_v28 }
 0x126   :  { %v979_v40 = vmul.f32 %v915_v31, %v723_v30  ;;  %2333 = verf.f32 %v792_v35  ;;  %v796_v8 = vmul.f32 0.70710677, %v570_v49 }
 0x127   :  { %v2962_v52 = vpop.f32.mrb[40].mxu0  ;;  %v2328_v42 = vpop.eup %2327  ;;  %v980_v29 = vmul.f32 %v916_v39, %v724_v14  ;;  %2335 = verf.f32 %v793_v20  ;;  %v795_v60 = vmul.f32 0.70710677, %v565_v56 }
 0x128   :  { %2024 = vmatmul.mubr.msk.f32.gmra.mrb[94].mxu0 %vm1029_vm1, %v964_v22  ;;  %2033 = vmatmul.mubr.msk.f32.gmra.mrb[14].mxu1 %vm1029_vm1, %v973_v48  ;;  %v2967_v54 = vpop.f32.mrb[41].mxu0  ;;  %v917_v33 = vadd.f32 1.0, %v2328_v42  ;;  %2337 = verf.f32 %v794_v55  ;;  %v580_v63 = vadd.f32 %v2962_v52, %v2761_v26  ;;  %v730_v52 = vmul.f32 0.5, %v560_v45 }
 0x129   :  { %1382 = vmatprep.mubr.f32.mxu0 %v2416_v16  ;;  %1436 = vmatprep.mubr.f32.mxu1 %v2416_v16  ;;  %2339 = verf.f32 %v795_v60  ;;  %v731_v42 = vmul.f32 0.5, %v565_v56 }
 0x12a   :  { %v2330_v48 = vpop.eup %2329  ;;  %2341 = verf.f32 %v796_v8  ;;  %v798_v30 = vmul.f32 0.70710677, %v580_v63  ;;  %v734_v60 = vmul.f32 0.5, %v580_v63 }
 0x12b   :  { %v2975_v61 = vpop.f32.mrb[42].mxu0 }
 0x12c   :  { %2025 = vmatmul.mubr.msk.f32.gmra.mrb[96].mxu0 %vm1029_vm1, %v965_v41  ;;  %2034 = vmatmul.mubr.msk.f32.gmra.mrb[16].mxu1 %vm1029_vm1, %v974_v32  ;;  %v2979_v62 = vpop.f32.mrb[43].mxu0  ;;  %v918_v41 = vadd.f32 1.0, %v2330_v48  ;;  %v981_v32 = vmul.f32 %v917_v33, %v725_v27  ;;  %v732_v27 = vmul.f32 0.5, %v570_v49 }
 0x12d   :  { %1442 = vmatprep.mubr.f32.mxu1 %v2416_v16  ;;  %v585_v31 = vadd.f32 %v2761_v26, %v2979_v62 }
 0x12e   :  { %v2332_v38 = vpop.eup %2331  ;;  %v982_v36 = vmul.f32 %v918_v41, %v726_v12 }
 0x12f   :  { %v2985_v6 = vpop.f32.mrb[44].mxu0  ;;  %v919_v57 = vadd.f32 1.0, %v2332_v38  ;;  %v799_v39 = vmul.f32 0.70710677, %v585_v31 }
 0x130   :  { %2035 = vmatmul.mubr.msk.f32.gmra.mrb[18].mxu1 %vm1029_vm1, %v975_v3  ;;  %v2988_v46 = vpop.f32.mrb[45].mxu0  ;;  %v2334_v3 = vpop.eup %2333  ;;  %v600_v55 = vadd.f32 %v2985_v6, %v2761_v26 }
 0x131   :  { %1448 = vmatprep.mubr.f32.mxu1 %v2416_v16  ;;  %v920_v13 = vadd.f32 1.0, %v2334_v3  ;;  %v983_v2 = vmul.f32 %v919_v57, %v727_v0  ;;  %v2336_v5 = vpop.eup %2335  ;;  %v595_v45 = vadd.f32 %v2761_v26, %v2988_v46 }
 0x132   :  { %v921_v19 = vadd.f32 1.0, %v2336_v5  ;;  %v2338_v28 = vpop.eup %2337  ;;  %v802_v46 = vmul.f32 0.70710677, %v600_v55 }
 0x133   :  { %v2994_v15 = vpop.f32.mrb[46].mxu0  ;;  %v922_v34 = vadd.f32 1.0, %v2338_v28  ;;  %v2340_v14 = vpop.eup %2339  ;;  %v801_v56 = vmul.f32 0.70710677, %v595_v45  ;;  %v737_v28 = vmul.f32 0.5, %v595_v45 }
 0x134   :  { %2036 = vmatmul.mubr.msk.f32.gmra.mrb[20].mxu1 %vm1029_vm1, %v976_v1  ;;  %v2997_v11 = vpop.f32.mrb[47].mxu0  ;;  %v575_v1 = vadd.f32 %v2761_v26, %v2967_v54  ;;  %v984_v54 = vmul.f32 %v920_v13, %v728_v18  ;;  %v923_v20 = vadd.f32 1.0, %v2340_v14  ;;  %v610_v57 = vadd.f32 %v2994_v15, %v2761_v26 }
 0x135   :  { %1454 = vmatprep.mubr.f32.mxu1 %v2416_v16  ;;  %v605_v49 = vadd.f32 %v2761_v26, %v2997_v11 }
 0x136   :  { %v797_v23 = vmul.f32 0.70710677, %v575_v1  ;;  %v987_v48 = vmul.f32 %v923_v20, %v731_v42  ;;  %v733_v41 = vmul.f32 0.5, %v575_v1  ;;  %v735_v1 = vmul.f32 0.5, %v585_v31 }
 0x137   :  { %v3003_v24 = vpop.f32.mrb[48].mxu0  ;;  %v803_v3 = vmul.f32 0.70710677, %v605_v49  ;;  %v804_v11 = vmul.f32 0.70710677, %v610_v57  ;;  %v739_v42 = vmul.f32 0.5, %v605_v49 }
 0x138   :  { %2037 = vmatmul.mubr.msk.f32.gmra.mrb[22].mxu1 %vm1029_vm1, %v977_v58  ;;  %v3006_v25 = vpop.f32.mrb[49].mxu0  ;;  %v729_v58 = vmul.f32 0.5, %v555_v37  ;;  %2343 = verf.f32 %v797_v23  ;;  %v590_v37 = vadd.f32 %v2975_v61, %v2761_v26  ;;  %v740_v45 = vmul.f32 0.5, %v610_v57 }
 0x139   :  { %1460 = vmatprep.mubr.f32.mxu1 %v2416_v16  ;;  %2345 = verf.f32 %v798_v30 }
 0x13a   :  { %v985_v35 = vmul.f32 %v921_v19, %v729_v58  ;;  %v800_v62 = vmul.f32 0.70710677, %v590_v37  ;;  %2347 = verf.f32 %v799_v39  ;;  %v736_v5 = vmul.f32 0.5, %v590_v37 }
 0x13b   :  { %v3012_v4 = vpop.f32.mrb[50].mxu0 }
 0x13c   :  { %2038 = vmatmul.mubr.msk.f32.gmra.mrb[24].mxu1 %vm1029_vm1, %v978_v17  ;;  %v3015_v10 = vpop.f32.mrb[51].mxu0  ;;  %2349 = verf.f32 %v800_v62  ;;  %v630_v37 = vadd.f32 %v3012_v4, %v2761_v26 }
 0x13d   :  { %1466 = vmatprep.mubr.f32.mxu1 %v2416_v16  ;;  %2351 = verf.f32 %v801_v56 }
 0x13e   :  { %2353 = verf.f32 %v802_v46 }
 0x13f   :  { %v3020_v22 = vpop.f32.mrb[52].mxu0  ;;  %2355 = verf.f32 %v803_v3 }
 0x140   :  { %2039 = vmatmul.mubr.msk.f32.gmra.mrb[26].mxu1 %vm1029_vm1, %v979_v40  ;;  %v3023_v43 = vpop.f32.mrb[53].mxu0  ;;  %v986_v40 = vmul.f32 %v922_v34, %v730_v52  ;;  %2357 = verf.f32 %v804_v11  ;;  %v625_v52 = vadd.f32 %v2761_v26, %v3015_v10  ;;  %v738_v34 = vmul.f32 0.5, %v600_v55 }
 0x141   :  { %1472 = vmatprep.mubr.f32.mxu1 %v2416_v16  ;;  %v808_v10 = vmul.f32 0.70710677, %v630_v37  ;;  %v635_v62 = vadd.f32 %v2761_v26, %v3023_v43 }
 0x142   :  { %v807_v39 = vmul.f32 0.70710677, %v625_v52 }
 0x143   :  { %v3028_v50 = vpop.f32.mrb[54].mxu0 }
 0x144   :  { %2040 = vmatmul.mubr.msk.f32.gmra.mrb[28].mxu1 %vm1029_vm1, %v980_v29  ;;  %v3031_v53 = vpop.f32.mrb[55].mxu0  ;;  %v2342_v29 = vpop.eup %2341 }
 0x145   :  { %1478 = vmatprep.mubr.f32.mxu1 %v2416_v16  ;;  %v924_v33 = vadd.f32 1.0, %v2342_v29  ;;  %v2344_v61 = vpop.eup %2343 }
 0x146   :  { %v2346_v38 = vpop.eup %2345 }
 0x147   :  { %v3036_v59 = vpop.f32.mrb[56].mxu0  ;;  %v988_v12 = vmul.f32 %v924_v33, %v732_v27  ;;  %v2348_v6 = vpop.eup %2347 }
 0x148   :  { %2041 = vmatmul.mubr.msk.f32.gmra.mrb[30].mxu1 %vm1029_vm1, %v981_v32  ;;  %v3039_v47 = vpop.f32.mrb[57].mxu0  ;;  %v925_v32 = vadd.f32 1.0, %v2344_v61  ;;  %v927_v18 = vadd.f32 1.0, %v2348_v6  ;;  %v2350_v13 = vpop.eup %2349  ;;  %v809_v61 = vmul.f32 0.70710677, %v635_v62  ;;  %v743_v6 = vmul.f32 0.5, %v625_v52 }
 0x149   :  { %1484 = vmatprep.mubr.f32.mxu1 %v2416_v16  ;;  %v928_v63 = vadd.f32 1.0, %v2350_v13  ;;  %v2352_v15 = vpop.eup %2351 }
 0x14a   :  { %v989_v0 = vmul.f32 %v925_v32, %v733_v41  ;;  %v991_v23 = vmul.f32 %v927_v18, %v735_v1  ;;  %v929_v30 = vadd.f32 1.0, %v2352_v15  ;;  %v2354_v31 = vpop.eup %2353  ;;  %v3116_v32 = vld [vmem:[%s3196_s2] ss:$0 sm:$0xff]  ;;  %v744_v1 = vmul.f32 0.5, %v630_v37 }
 0x14b   :  { %v3044_v44 = vpop.f32.mrb[58].mxu0  ;;  %v992_v19 = vmul.f32 %v928_v63, %v736_v5  ;;  %v660_v11 = vadd.f32 %v3116_v32, %v3036_v59  ;;  %v745_v63 = vmul.f32 0.5, %v635_v62 }
 0x14c   :  { %2042 = vmatmul.mubr.msk.f32.gmra.mrb[32].mxu1 %vm1029_vm1, %v982_v36  ;;  %v3047_v7 = vpop.f32.mrb[59].mxu0  ;;  %v926_v36 = vadd.f32 1.0, %v2346_v38  ;;  %v993_v14 = vmul.f32 %v929_v30, %v737_v28  ;;  %v645_v38 = vadd.f32 %v3116_v32, %v3031_v53  ;;  %v670_v30 = vadd.f32 %v3116_v32, %v3044_v44 }
 0x14d   :  { %1490 = vmatprep.mubr.f32.mxu1 %v2416_v16 }
 0x14e   :  { %v990_v8 = vmul.f32 %v926_v36, %v734_v60  ;;  %v650_v60 = vadd.f32 %v3116_v32, %v3028_v50  ;;  %v811_v36 = vmul.f32 0.70710677, %v645_v38  ;;  %v747_v52 = vmul.f32 0.5, %v645_v38 }
 0x14f   :  { %v3052_v21 = vpop.f32.mrb[60].mxu0 }
 0x150   :  { %2043 = vmatmul.mubr.msk.f32.gmra.mrb[34].mxu1 %vm1029_vm1, %v983_v2  ;;  %v3055_v51 = vpop.f32.mrb[61].mxu0  ;;  %v615_v2 = vadd.f32 %v2761_v26, %v3006_v25  ;;  %v812_v53 = vmul.f32 0.70710677, %v650_v60 }
 0x151   :  { %1496 = vmatprep.mubr.f32.mxu1 %v2416_v16 }
 0x152   :  { %v805_v58 = vmul.f32 0.70710677, %v615_v2  ;;  %v741_v56 = vmul.f32 0.5, %v615_v2 }
 0x153   :  { %v3060_v9 = vpop.f32.mrb[62].mxu0 }
 0x154   :  { %2044 = vmatmul.mubr.msk.f32.gmra.mrb[36].mxu1 %vm1029_vm1, %v984_v54  ;;  %v3063_v17 = vpop.f32.mrb[63].mxu0  ;;  %v620_v54 = vadd.f32 %v3003_v24, %v2761_v26  ;;  %2359 = verf.f32 %v805_v58  ;;  %v2356_v24 = vpop.eup %2355 }
 0x155   :  { %1502 = vmatprep.mubr.f32.mxu1 %v2416_v16  ;;  %v931_v20 = vadd.f32 1.0, %v2356_v24  ;;  %v2358_v29 = vpop.eup %2357  ;;  %v748_v24 = vmul.f32 0.5, %v650_v60 }
 0x156   :  { %v806_v25 = vmul.f32 0.70710677, %v620_v54  ;;  %v932_v27 = vadd.f32 1.0, %v2358_v29 }
 0x157   :  { %v995_v33 = vmul.f32 %v931_v20, %v739_v42 }
 0x158   :  { %2045 = vmatmul.mubr.msk.f32.gmra.mrb[38].mxu1 %vm1029_vm1, %v985_v35  ;;  %v930_v35 = vadd.f32 1.0, %v2354_v31  ;;  %2361 = verf.f32 %v806_v25  ;;  %v996_v55 = vmul.f32 %v932_v27, %v740_v45  ;;  %v685_v45 = vadd.f32 %v3116_v32, %v3063_v17 }
 0x159   :  { %1508 = vmatprep.mubr.f32.mxu1 %v2416_v16  ;;  %2363 = verf.f32 %v807_v39  ;;  %v750_v27 = vmul.f32 0.5, %v660_v11 }
 0x15a   :  { %2365 = verf.f32 %v808_v10 }
 0x15b   :  { %2367 = verf.f32 %v809_v61  ;;  %v819_v61 = vmul.f32 0.70710677, %v685_v45 }
 0x15c   :  { %2046 = vmatmul.mubr.msk.f32.gmra.mrb[40].mxu1 %vm1029_vm1, %v986_v40  ;;  %v994_v40 = vmul.f32 %v930_v35, %v738_v34 }
 0x15d   :  { %1514 = vmatprep.mubr.f32.mxu1 %v2416_v16 }
 0x15e   :  { %v2360_v4 = vpop.eup %2359 }
 0x160   :  { %2047 = vmatmul.mubr.msk.f32.gmra.mrb[42].mxu1 %vm1029_vm1, %v987_v48  ;;  %v640_v48 = vadd.f32 %v3020_v22, %v2761_v26  ;;  %v742_v26 = vmul.f32 0.5, %v620_v54  ;;  %v665_v54 = vadd.f32 %v3116_v32, %v3047_v7  ;;  %v816_v7 = vmul.f32 0.70710677, %v670_v30 }
 0x161   :  { %1520 = vmatprep.mubr.f32.mxu1 %v2416_v16 }
 0x162   :  { %v2362_v41 = vpop.eup %2361  ;;  %v810_v43 = vmul.f32 0.70710677, %v640_v48  ;;  %v746_v58 = vmul.f32 0.5, %v640_v48  ;;  %v815_v31 = vmul.f32 0.70710677, %v665_v54  ;;  %v690_v48 = vadd.f32 %v3116_v32, %v3060_v9 }
 0x163   :  { %v934_v22 = vadd.f32 1.0, %v2362_v41  ;;  %v2364_v49 = vpop.eup %2363 }
 0x164   :  { %2048 = vmatmul.mubr.msk.f32.gmra.mrb[44].mxu1 %vm1029_vm1, %v988_v12  ;;  %v933_v12 = vadd.f32 1.0, %v2360_v4  ;;  %2369 = verf.f32 %v810_v43  ;;  %v935_v57 = vadd.f32 1.0, %v2364_v49  ;;  %v2366_v3 = vpop.eup %2365  ;;  %v820_v17 = vmul.f32 0.70710677, %v690_v48 }
 0x165   :  { %1526 = vmatprep.mubr.f32.mxu1 %v2416_v16  ;;  %2371 = verf.f32 %v811_v36  ;;  %v936_v18 = vadd.f32 1.0, %v2366_v3  ;;  %v2368_v50 = vpop.eup %2367  ;;  %v752_v43 = vmul.f32 0.5, %v670_v30  ;;  %v755_v3 = vmul.f32 0.5, %v685_v45 }
 0x166   :  { %v997_v46 = vmul.f32 %v933_v12, %v741_v56  ;;  %v999_v13 = vmul.f32 %v935_v57, %v743_v6  ;;  %2373 = verf.f32 %v812_v53  ;;  %v751_v56 = vmul.f32 0.5, %v665_v54 }
 0x167   :  { %v1000_v5 = vmul.f32 %v936_v18, %v744_v1  ;;  %v756_v1 = vmul.f32 0.5, %v690_v48 }
 0x168   :  { %2049 = vmatmul.mubr.msk.f32.gmra.mrb[46].mxu1 %vm1029_vm1, %v989_v0  ;;  %v998_v0 = vmul.f32 %v934_v22, %v742_v26 }
 0x169   :  { %1532 = vmatprep.mubr.f32.mxu1 %v2416_v16 }
 0x16c   :  { %2050 = vmatmul.mubr.msk.f32.gmra.mrb[48].mxu1 %vm1029_vm1, %v990_v8  ;;  %v655_v8 = vadd.f32 %v3116_v32, %v3039_v47  ;;  %v814_v47 = vmul.f32 0.70710677, %v660_v11 }
 0x16d   :  { %1538 = vmatprep.mubr.f32.mxu1 %v2416_v16 }
 0x16e   :  { %v813_v2 = vmul.f32 0.70710677, %v655_v8  ;;  %v2370_v15 = vpop.eup %2369  ;;  %v749_v29 = vmul.f32 0.5, %v655_v8 }
 0x16f   :  { %v2372_v59 = vpop.eup %2371 }
 0x170   :  { %2051 = vmatmul.mubr.msk.f32.gmra.mrb[50].mxu1 %vm1029_vm1, %v991_v23  ;;  %v937_v23 = vadd.f32 1.0, %v2368_v50  ;;  %2375 = verf.f32 %v813_v2  ;;  %v939_v34 = vadd.f32 1.0, %v2372_v59  ;;  %v2374_v35 = vpop.eup %2373 }
 0x171   :  { %1544 = vmatprep.mubr.f32.mxu1 %v2416_v16  ;;  %2377 = verf.f32 %v814_v47  ;;  %v940_v37 = vadd.f32 1.0, %v2374_v35 }
 0x172   :  { %v1001_v28 = vmul.f32 %v937_v23, %v745_v63  ;;  %2379 = verf.f32 %v815_v31  ;;  %v1003_v39 = vmul.f32 %v939_v34, %v747_v52 }
 0x173   :  { %2381 = verf.f32 %v816_v7  ;;  %v1004_v20 = vmul.f32 %v940_v37, %v748_v24 }
 0x174   :  { %2052 = vmatmul.mubr.msk.f32.gmra.mrb[52].mxu1 %vm1029_vm1, %v992_v19  ;;  %v938_v19 = vadd.f32 1.0, %v2370_v15 }
 0x175   :  { %1550 = vmatprep.mubr.f32.mxu1 %v2416_v16 }
 0x176   :  { %v1002_v25 = vmul.f32 %v938_v19, %v746_v58 }
 0x178   :  { %2053 = vmatmul.mubr.msk.f32.gmra.mrb[54].mxu1 %vm1029_vm1, %v993_v14  ;;  %v675_v14 = vadd.f32 %v3116_v32, %v3055_v51 }
 0x179   :  { %1556 = vmatprep.mubr.f32.mxu1 %v2416_v16 }
 0x17a   :  { %v2376_v44 = vpop.eup %2375  ;;  %v817_v42 = vmul.f32 0.70710677, %v675_v14 }
 0x17b   :  { %v941_v10 = vadd.f32 1.0, %v2376_v44  ;;  %v2378_v62 = vpop.eup %2377 }
 0x17c   :  { %2054 = vmatmul.mubr.msk.f32.gmra.mrb[56].mxu1 %vm1029_vm1, %v994_v40  ;;  %v680_v40 = vadd.f32 %v3116_v32, %v3052_v21  ;;  %2383 = verf.f32 %v817_v42  ;;  %v2380_v21 = vpop.eup %2379  ;;  %v753_v32 = vmul.f32 0.5, %v675_v14 }
 0x17d   :  { %1562 = vmatprep.mubr.f32.mxu1 %v2416_v16  ;;  %v1005_v4 = vmul.f32 %v941_v10, %v749_v29  ;;  %v943_v12 = vadd.f32 1.0, %v2380_v21  ;;  %v2382_v41 = vpop.eup %2381 }
 0x17e   :  { %v818_v51 = vmul.f32 0.70710677, %v680_v40  ;;  %v944_v38 = vadd.f32 1.0, %v2382_v41  ;;  %v754_v60 = vmul.f32 0.5, %v680_v40 }
 0x17f   :  { %v1007_v26 = vmul.f32 %v943_v12, %v751_v56 }
 0x180   :  { %2055 = vmatmul.mubr.msk.f32.gmra.mrb[58].mxu1 %vm1029_vm1, %v995_v33  ;;  %v942_v33 = vadd.f32 1.0, %v2378_v62  ;;  %2385 = verf.f32 %v818_v51  ;;  %v1008_v9 = vmul.f32 %v944_v38, %v752_v43 }
 0x181   :  { %1568 = vmatprep.mubr.f32.mxu1 %v2416_v16  ;;  %2387 = verf.f32 %v819_v61 }
 0x182   :  { %2389 = verf.f32 %v820_v17 }
 0x184   :  { %2056 = vmatmul.mubr.msk.f32.gmra.mrb[60].mxu1 %vm1029_vm1, %v996_v55  ;;  %v1006_v55 = vmul.f32 %v942_v33, %v750_v27 }
 0x185   :  { %1574 = vmatprep.mubr.f32.mxu1 %v2416_v16 }
 0x186   :  { %v2384_v22 = vpop.eup %2383 }
 0x188   :  { %2057 = vmatmul.mubr.msk.f32.gmra.mrb[62].mxu1 %vm1029_vm1, %v997_v46  ;;  %v945_v46 = vadd.f32 1.0, %v2384_v22 }
 0x189   :  { %1580 = vmatprep.mubr.f32.mxu1 %v2416_v16 }
 0x18a   :  { %v2386_v49 = vpop.eup %2385 }
 0x18b   :  { %v946_v36 = vadd.f32 1.0, %v2386_v49  ;;  %v2388_v6 = vpop.eup %2387 }
 0x18c   :  { %2058 = vmatmul.mubr.msk.f32.gmra.mrb[64].mxu1 %vm1029_vm1, %v998_v0  ;;  %v1009_v0 = vmul.f32 %v945_v46, %v753_v32  ;;  %v947_v53 = vadd.f32 1.0, %v2388_v6  ;;  %v2390_v8 = vpop.eup %2389 }
 0x18d   :  { %1586 = vmatprep.mubr.f32.mxu1 %v2416_v16  ;;  %v1010_v57 = vmul.f32 %v946_v36, %v754_v60  ;;  %v948_v18 = vadd.f32 1.0, %v2390_v8 }
 0x18f   :  { %v1012_v2 = vmul.f32 %v948_v18, %v756_v1 }
 0x190   :  { %2059 = vmatmul.mubr.msk.f32.gmra.mrb[66].mxu1 %vm1029_vm1, %v999_v13  ;;  %v1011_v13 = vmul.f32 %v947_v53, %v755_v3 }
 0x191   :  { %1592 = vmatprep.mubr.f32.mxu1 %v2416_v16 }
 0x194   :  { %2060 = vmatmul.mubr.msk.f32.gmra.mrb[68].mxu1 %vm1029_vm1, %v1000_v5 }
 0x195   :  { %1598 = vmatprep.mubr.f32.mxu1 %v2416_v16 }
 0x198   :  { %2061 = vmatmul.mubr.msk.f32.gmra.mrb[70].mxu1 %vm1029_vm1, %v1001_v28 }
 0x199   :  { %1604 = vmatprep.mubr.f32.mxu1 %v2416_v16 }
 0x19c   :  { %2062 = vmatmul.mubr.msk.f32.gmra.mrb[72].mxu1 %vm1029_vm1, %v1002_v25 }
 0x19d   :  { %1610 = vmatprep.mubr.f32.mxu1 %v2416_v16 }
 0x1a0   :  { %2063 = vmatmul.mubr.msk.f32.gmra.mrb[74].mxu1 %vm1029_vm1, %v1003_v39 }
 0x1a1   :  { %1616 = vmatprep.mubr.f32.mxu1 %v2416_v16 }
 0x1a4   :  { %2064 = vmatmul.mubr.msk.f32.gmra.mrb[76].mxu1 %vm1029_vm1, %v1004_v20 }
 0x1a5   :  { %1622 = vmatprep.mubr.f32.mxu1 %v2416_v16 }
 0x1a8   :  { %2065 = vmatmul.mubr.msk.f32.gmra.mrb[78].mxu1 %vm1029_vm1, %v1005_v4 }
 0x1a9   :  { %1628 = vmatprep.mubr.f32.mxu1 %v2416_v16 }
 0x1ac   :  { %2066 = vmatmul.mubr.msk.f32.gmra.mrb[80].mxu1 %vm1029_vm1, %v1006_v55 }
 0x1ad   :  { %1634 = vmatprep.mubr.f32.mxu1 %v2416_v16 }
 0x1b0   :  { %2067 = vmatmul.mubr.msk.f32.gmra.mrb[82].mxu1 %vm1029_vm1, %v1007_v26 }
 0x1b1   :  { %1640 = vmatprep.mubr.f32.mxu1 %v2416_v16 }
 0x1b4   :  { %2068 = vmatmul.mubr.msk.f32.gmra.mrb[84].mxu1 %vm1029_vm1, %v1008_v9 }
 0x1b5   :  { %1646 = vmatprep.mubr.f32.mxu1 %v2416_v16 }
 0x1b8   :  { %2069 = vmatmul.mubr.msk.f32.gmra.mrb[86].mxu1 %vm1029_vm1, %v1009_v0 }
 0x1b9   :  { %1652 = vmatprep.mubr.f32.mxu1 %v2416_v16 }
 0x1bc   :  { %2070 = vmatmul.mubr.msk.f32.gmra.mrb[88].mxu1 %vm1029_vm1, %v1010_v57 }
 0x1bd   :  { %1658 = vmatprep.mubr.f32.mxu1 %v2416_v16 }
 0x1bf   :  { %v1288_v50 = vpop.f32.mrb[64].mxu0 }
 0x1c0   :  { %v1290_v11 = vpop.f32.mrb[65].mxu0  ;;  %2071 = vmatmul.mubr.msk.f32.gmra.mrb[90].mxu1 %vm1029_vm1, %v1011_v13 }
 0x1c1   :  { %1664 = vmatprep.mubr.f32.mxu1 %v2416_v16 }
 0x1c3   :  { %v1294_v5 = vpop.f32.mrb[66].mxu0 }
 0x1c4   :  { %v1671_v63 = vmax.f32 %v1288_v50, %v1294_v5  ;;  %v1296_v23 = vpop.f32.mrb[67].mxu0  ;;  %2072 = vmatmul.mubr.msk.f32.gmra.mrb[92].mxu1 %vm1029_vm1, %v1012_v2 }
 0x1c5   :  { %v1708_v15 = vmax.f32 %v1290_v11, %v1296_v23 }
 0x1c7   :  { %v1300_v47 = vpop.f32.mrb[68].mxu0 }
 0x1c8   :  { %v1672_v54 = vmax.f32 %v1671_v63, %v1300_v47  ;;  %v1302_v58 = vpop.f32.mrb[69].mxu0 }
 0x1c9   :  { %v1709_v19 = vmax.f32 %v1708_v15, %v1302_v58 }
 0x1cb   :  { %v1306_v28 = vpop.f32.mrb[70].mxu0 }
 0x1cc   :  { %v1673_v59 = vmax.f32 %v1672_v54, %v1306_v28  ;;  %v1308_v30 = vpop.f32.mrb[71].mxu0 }
 0x1cd   :  { %v1710_v31 = vmax.f32 %v1709_v19, %v1308_v30 }
 0x1cf   :  { %v1312_v25 = vpop.f32.mrb[72].mxu0 }
 0x1d0   :  { %v1674_v52 = vmax.f32 %v1673_v59, %v1312_v25  ;;  %v1314_v34 = vpop.f32.mrb[73].mxu0 }
 0x1d1   :  { %v1711_v35 = vmax.f32 %v1710_v31, %v1314_v34 }
 0x1d3   :  { %v1318_v16 = vpop.f32.mrb[74].mxu0 }
 0x1d4   :  { %v1675_v7 = vmax.f32 %v1674_v52, %v1318_v16  ;;  %v1320_v14 = vpop.f32.mrb[75].mxu0 }
 0x1d5   :  { %v1712_v24 = vmax.f32 %v1711_v35, %v1320_v14 }
 0x1d7   :  { %v1324_v37 = vpop.f32.mrb[76].mxu0 }
 0x1d8   :  { %v1676_v39 = vmax.f32 %v1675_v7, %v1324_v37  ;;  %v1326_v44 = vpop.f32.mrb[77].mxu0 }
 0x1d9   :  { %v1713_v40 = vmax.f32 %v1712_v24, %v1326_v44 }
 0x1db   :  { %v1330_v42 = vpop.f32.mrb[78].mxu0 }
 0x1dc   :  { %v1677_v20 = vmax.f32 %v1676_v39, %v1330_v42  ;;  %v1332_v29 = vpop.f32.mrb[79].mxu0 }
 0x1dd   :  { %v1714_v10 = vmax.f32 %v1713_v40, %v1332_v29 }
 0x1de   :  { %v1390_v62 = vpop.f32.mrb[0].mxu1 }
 0x1df   :  { %v1336_v51 = vpop.f32.mrb[80].mxu0  ;;  %v1392_v45 = vpop.f32.mrb[1].mxu1 }
 0x1e0   :  { %v1678_v27 = vmax.f32 %v1677_v20, %v1336_v51  ;;  %v1338_v33 = vpop.f32.mrb[81].mxu0 }
 0x1e1   :  { %v1715_v4 = vmax.f32 %v1714_v10, %v1338_v33 }
 0x1e3   :  { %v1342_v21 = vpop.f32.mrb[82].mxu0  ;;  %v1396_v48 = vpop.f32.mrb[2].mxu1 }
 0x1e4   :  { %v1679_v61 = vmax.f32 %v1678_v27, %v1342_v21  ;;  %v1344_v55 = vpop.f32.mrb[83].mxu0  ;;  %v1398_v56 = vpop.f32.mrb[3].mxu1 }
 0x1e5   :  { %v1716_v12 = vmax.f32 %v1715_v4, %v1344_v55 }
 0x1e7   :  { %v1348_v41 = vpop.f32.mrb[84].mxu0  ;;  %v1402_v17 = vpop.f32.mrb[4].mxu1 }
 0x1e8   :  { %v1680_v43 = vmax.f32 %v1679_v61, %v1348_v41  ;;  %v1350_v38 = vpop.f32.mrb[85].mxu0  ;;  %v1404_v26 = vpop.f32.mrb[5].mxu1 }
 0x1e9   :  { %v1717_v22 = vmax.f32 %v1716_v12, %v1350_v38 }
 0x1eb   :  { %v1354_v9 = vpop.f32.mrb[86].mxu0  ;;  %v1408_v32 = vpop.f32.mrb[6].mxu1 }
 0x1ec   :  { %v1681_v46 = vmax.f32 %v1680_v43, %v1354_v9  ;;  %v1356_v49 = vpop.f32.mrb[87].mxu0  ;;  %v1410_v60 = vpop.f32.mrb[7].mxu1 }
 0x1ed   :  { %v1718_v36 = vmax.f32 %v1717_v22, %v1356_v49 }
 0x1ef   :  { %v1360_v0 = vpop.f32.mrb[88].mxu0  ;;  %v1414_v6 = vpop.f32.mrb[8].mxu1 }
 0x1f0   :  { %v1682_v57 = vmax.f32 %v1681_v46, %v1360_v0  ;;  %v1362_v3 = vpop.f32.mrb[89].mxu0  ;;  %v1416_v53 = vpop.f32.mrb[9].mxu1 }
 0x1f1   :  { %v1719_v8 = vmax.f32 %v1718_v36, %v1362_v3 }
 0x1f3   :  { %v1366_v1 = vpop.f32.mrb[90].mxu0  ;;  %v1420_v18 = vpop.f32.mrb[10].mxu1 }
 0x1f4   :  { %v1683_v13 = vmax.f32 %v1682_v57, %v1366_v1  ;;  %v1368_v50 = vpop.f32.mrb[91].mxu0  ;;  %v1422_v11 = vpop.f32.mrb[11].mxu1 }
 0x1f5   :  { %v1720_v2 = vmax.f32 %v1719_v8, %v1368_v50 }
 0x1f7   :  { %v1372_v5 = vpop.f32.mrb[92].mxu0  ;;  %v1426_v63 = vpop.f32.mrb[12].mxu1 }
 0x1f8   :  { %v1684_v23 = vmax.f32 %v1683_v13, %v1372_v5  ;;  %v1374_v15 = vpop.f32.mrb[93].mxu0  ;;  %v1428_v47 = vpop.f32.mrb[13].mxu1 }
 0x1f9   :  { %v1721_v54 = vmax.f32 %v1720_v2, %v1374_v15 }
 0x1fb   :  { %v1378_v58 = vpop.f32.mrb[94].mxu0  ;;  %v1432_v19 = vpop.f32.mrb[14].mxu1 }
 0x1fc   :  { %v1685_v28 = vmax.f32 %v1684_v23, %v1378_v58  ;;  %v1380_v59 = vpop.f32.mrb[95].mxu0  ;;  %v1434_v30 = vpop.f32.mrb[15].mxu1 }
 0x1fd   :  { %v1722_v31 = vmax.f32 %v1721_v54, %v1380_v59 }
 0x1ff   :  { %v1384_v25 = vpop.f32.mrb[96].mxu0  ;;  %v1438_v52 = vpop.f32.mrb[16].mxu1 }
 0x200   :  { %v1686_v34 = vmax.f32 %v1685_v28, %v1384_v25  ;;  %v1386_v35 = vpop.f32.mrb[97].mxu0  ;;  %v1440_v16 = vpop.f32.mrb[17].mxu1 }
 0x201   :  { %v1723_v7 = vmax.f32 %v1722_v31, %v1386_v35 }
 0x202   :  { %v1687_v14 = vmax.f32 %v1686_v34, %v1390_v62 }
 0x203   :  { %v1724_v24 = vmax.f32 %v1723_v7, %v1392_v45  ;;  %v1444_v37 = vpop.f32.mrb[18].mxu1 }
 0x204   :  { %v1688_v39 = vmax.f32 %v1687_v14, %v1396_v48  ;;  %v1446_v44 = vpop.f32.mrb[19].mxu1 }
 0x205   :  { %v1725_v40 = vmax.f32 %v1724_v24, %v1398_v56 }
 0x206   :  { %v1689_v42 = vmax.f32 %v1688_v39, %v1402_v17 }
 0x207   :  { %v1726_v20 = vmax.f32 %v1725_v40, %v1404_v26  ;;  %v1450_v29 = vpop.f32.mrb[20].mxu1 }
 0x208   :  { %v1690_v10 = vmax.f32 %v1689_v42, %v1408_v32  ;;  %v1452_v51 = vpop.f32.mrb[21].mxu1 }
 0x209   :  { %v1727_v27 = vmax.f32 %v1726_v20, %v1410_v60 }
 0x20a   :  { %v1691_v33 = vmax.f32 %v1690_v10, %v1414_v6 }
 0x20b   :  { %v1728_v4 = vmax.f32 %v1727_v27, %v1416_v53  ;;  %v1456_v21 = vpop.f32.mrb[22].mxu1 }
 0x20c   :  { %v1692_v61 = vmax.f32 %v1691_v33, %v1420_v18  ;;  %v1458_v55 = vpop.f32.mrb[23].mxu1 }
 0x20d   :  { %v1729_v12 = vmax.f32 %v1728_v4, %v1422_v11 }
 0x20e   :  { %v1693_v41 = vmax.f32 %v1692_v61, %v1426_v63 }
 0x20f   :  { %v1730_v43 = vmax.f32 %v1729_v12, %v1428_v47  ;;  %v1462_v62 = vpop.f32.mrb[24].mxu1 }
 0x210   :  { %v1694_v45 = vmax.f32 %v1693_v41, %v1432_v19  ;;  %v1464_v38 = vpop.f32.mrb[25].mxu1 }
 0x211   :  { %v1731_v48 = vmax.f32 %v1730_v43, %v1434_v30 }
 0x212   :  { %v1695_v22 = vmax.f32 %v1694_v45, %v1438_v52 }
 0x213   :  { %v1732_v56 = vmax.f32 %v1731_v48, %v1440_v16  ;;  %v1468_v17 = vpop.f32.mrb[26].mxu1 }
 0x214   :  { %v1696_v26 = vmax.f32 %v1695_v22, %v1444_v37  ;;  %v1470_v9 = vpop.f32.mrb[27].mxu1 }
 0x215   :  { %v1733_v32 = vmax.f32 %v1732_v56, %v1446_v44 }
 0x216   :  { %v1697_v46 = vmax.f32 %v1696_v26, %v1450_v29 }
 0x217   :  { %v1734_v49 = vmax.f32 %v1733_v32, %v1452_v51  ;;  %v1474_v60 = vpop.f32.mrb[28].mxu1 }
 0x218   :  { %v1698_v36 = vmax.f32 %v1697_v46, %v1456_v21  ;;  %v1476_v0 = vpop.f32.mrb[29].mxu1 }
 0x219   :  { %v1735_v6 = vmax.f32 %v1734_v49, %v1458_v55 }
 0x21a   :  { %v1699_v57 = vmax.f32 %v1698_v36, %v1462_v62 }
 0x21b   :  { %v1736_v3 = vmax.f32 %v1735_v6, %v1464_v38  ;;  %v1480_v53 = vpop.f32.mrb[30].mxu1 }
 0x21c   :  { %v1700_v8 = vmax.f32 %v1699_v57, %v1468_v17  ;;  %v1482_v1 = vpop.f32.mrb[31].mxu1 }
 0x21d   :  { %v1737_v18 = vmax.f32 %v1736_v3, %v1470_v9 }
 0x21e   :  { %v1701_v13 = vmax.f32 %v1700_v8, %v1474_v60 }
 0x21f   :  { %v1738_v50 = vmax.f32 %v1737_v18, %v1476_v0  ;;  %v1486_v11 = vpop.f32.mrb[32].mxu1 }
 0x220   :  { %v1702_v2 = vrot.slane %v1701_v13, 4  ;;  %v1745_v5 = vmax.f32 %v1480_v53, %v1486_v11  ;;  %v1488_v63 = vpop.f32.mrb[33].mxu1 }
 0x221   :  { %v1739_v23 = vrot.slane %v1738_v50, 4  ;;  %v1782_v15 = vmax.f32 %v1482_v1, %v1488_v63 }
 0x222   :  { %v1703_v47 = vmax.f32 %v1701_v13, %v1702_v2 }
 0x223   :  { %v1740_v54 = vmax.f32 %v1738_v50, %v1739_v23  ;;  %v1492_v58 = vpop.f32.mrb[34].mxu1 }
 0x224   :  { %v1704_v19 = vrot.slane %v1703_v47, 2  ;;  %v1746_v28 = vmax.f32 %v1745_v5, %v1492_v58  ;;  %v1494_v59 = vpop.f32.mrb[35].mxu1 }
 0x225   :  { %v1741_v30 = vrot.slane %v1740_v54, 2  ;;  %v1783_v31 = vmax.f32 %v1782_v15, %v1494_v59 }
 0x226   :  { %v1705_v25 = vmax.f32 %v1703_v47, %v1704_v19 }
 0x227   :  { %v1742_v52 = vmax.f32 %v1740_v54, %v1741_v30  ;;  %v1498_v34 = vpop.f32.mrb[36].mxu1 }
 0x228   :  { %v1706_v35 = vrot.slane %v1705_v25, 1  ;;  %v1747_v16 = vmax.f32 %v1746_v28, %v1498_v34  ;;  %v1500_v7 = vpop.f32.mrb[37].mxu1 }
 0x229   :  { %v1743_v14 = vrot.slane %v1742_v52, 1  ;;  %v1784_v24 = vmax.f32 %v1783_v31, %v1500_v7 }
 0x22a   :  { %v3170_v37 = vmax.f32 %v1705_v25, %v1706_v35 }
 0x22b   :  { %v3172_v39 = vmax.f32 %v1742_v52, %v1743_v14  ;;  %v1504_v44 = vpop.f32.mrb[38].mxu1 }
 0x22c   :  { %v1748_v40 = vmax.f32 %v1747_v16, %v1504_v44  ;;  %v1506_v42 = vpop.f32.mrb[39].mxu1 }
 0x22d   :  { %v1827_v20 = vcombine.low %v3170_v37, %v3172_v39  ;;  %v1785_v29 = vmax.f32 %v1784_v24, %v1506_v42 }
 0x22f   :  { %v1510_v10 = vpop.f32.mrb[40].mxu1 }
 0x230   :  { %v1749_v51 = vmax.f32 %v1748_v40, %v1510_v10  ;;  %v1512_v27 = vpop.f32.mrb[41].mxu1 }
 0x231   :  { %v1786_v33 = vmax.f32 %v1785_v29, %v1512_v27 }
 0x233   :  { %v1516_v4 = vpop.f32.mrb[42].mxu1 }
 0x234   :  { %v1750_v21 = vmax.f32 %v1749_v51, %v1516_v4  ;;  %v1518_v61 = vpop.f32.mrb[43].mxu1 }
 0x235   :  { %v1787_v55 = vmax.f32 %v1786_v33, %v1518_v61 }
 0x237   :  { %v1522_v12 = vpop.f32.mrb[44].mxu1 }
 0x238   :  { %v1751_v41 = vmax.f32 %v1750_v21, %v1522_v12  ;;  %v1524_v43 = vpop.f32.mrb[45].mxu1 }
 0x239   :  { %v1788_v62 = vmax.f32 %v1787_v55, %v1524_v43 }
 0x23b   :  { %v1528_v45 = vpop.f32.mrb[46].mxu1 }
 0x23c   :  { %v1752_v38 = vmax.f32 %v1751_v41, %v1528_v45  ;;  %v1530_v48 = vpop.f32.mrb[47].mxu1 }
 0x23d   :  { %v1789_v22 = vmax.f32 %v1788_v62, %v1530_v48 }
 0x23f   :  { %v1534_v56 = vpop.f32.mrb[48].mxu1 }
 0x240   :  { %v1753_v17 = vmax.f32 %v1752_v38, %v1534_v56  ;;  %v1536_v26 = vpop.f32.mrb[49].mxu1 }
 0x241   :  { %v1790_v9 = vmax.f32 %v1789_v22, %v1536_v26 }
 0x243   :  { %v1540_v32 = vpop.f32.mrb[50].mxu1 }
 0x244   :  { %v1754_v46 = vmax.f32 %v1753_v17, %v1540_v32  ;;  %v1542_v49 = vpop.f32.mrb[51].mxu1 }
 0x245   :  { %v1791_v60 = vmax.f32 %v1790_v9, %v1542_v49 }
 0x247   :  { %v1546_v36 = vpop.f32.mrb[52].mxu1 }
 0x248   :  { %v1755_v0 = vmax.f32 %v1754_v46, %v1546_v36  ;;  %v1548_v6 = vpop.f32.mrb[53].mxu1 }
 0x249   :  { %v1792_v57 = vmax.f32 %v1791_v60, %v1548_v6 }
 0x24b   :  { %v1552_v3 = vpop.f32.mrb[54].mxu1 }
 0x24c   :  { %v1756_v53 = vmax.f32 %v1755_v0, %v1552_v3  ;;  %v1554_v8 = vpop.f32.mrb[55].mxu1 }
 0x24d   :  { %v1793_v1 = vmax.f32 %v1792_v57, %v1554_v8 }
 0x24f   :  { %v1558_v18 = vpop.f32.mrb[56].mxu1 }
 0x250   :  { %v1757_v13 = vmax.f32 %v1756_v53, %v1558_v18  ;;  %v1560_v50 = vpop.f32.mrb[57].mxu1 }
 0x251   :  { %v1794_v11 = vmax.f32 %v1793_v1, %v1560_v50 }
 0x253   :  { %v1564_v2 = vpop.f32.mrb[58].mxu1 }
 0x254   :  { %v1758_v5 = vmax.f32 %v1757_v13, %v1564_v2  ;;  %v1566_v63 = vpop.f32.mrb[59].mxu1 }
 0x255   :  { %v1795_v23 = vmax.f32 %v1794_v11, %v1566_v63 }
 0x257   :  { %v1570_v15 = vpop.f32.mrb[60].mxu1 }
 0x258   :  { %v1759_v47 = vmax.f32 %v1758_v5, %v1570_v15  ;;  %v1572_v54 = vpop.f32.mrb[61].mxu1 }
 0x259   :  { %v1796_v58 = vmax.f32 %v1795_v23, %v1572_v54 }
 0x25b   :  { %v1576_v19 = vpop.f32.mrb[62].mxu1 }
 0x25c   :  { %v1760_v28 = vmax.f32 %v1759_v47, %v1576_v19  ;;  %v1578_v59 = vpop.f32.mrb[63].mxu1 }
 0x25d   :  { %v1797_v30 = vmax.f32 %v1796_v58, %v1578_v59 }
 0x25f   :  { %v1582_v31 = vpop.f32.mrb[64].mxu1 }
 0x260   :  { %v1761_v25 = vmax.f32 %v1760_v28, %v1582_v31  ;;  %v1584_v52 = vpop.f32.mrb[65].mxu1 }
 0x261   :  { %v1798_v34 = vmax.f32 %v1797_v30, %v1584_v52 }
 0x263   :  { %v1588_v35 = vpop.f32.mrb[66].mxu1 }
 0x264   :  { %v1762_v16 = vmax.f32 %v1761_v25, %v1588_v35  ;;  %v1590_v7 = vpop.f32.mrb[67].mxu1  ;;  %v2417_v35 = vmov 1983009808  }
 0x265   :  { %v1799_v14 = vmax.f32 %v1798_v34, %v1590_v7  ;;  %v1831_v7 = vlaneseq }
 0x267   :  { %v1594_v24 = vpop.f32.mrb[68].mxu1 }
 0x268   :  { %v1763_v44 = vmax.f32 %v1762_v16, %v1594_v24  ;;  %v1596_v40 = vpop.f32.mrb[69].mxu1  ;;  %v1829_v16 = vunpack.c.l.s4 %v2417_v35 }
 0x269   :  { %v1800_v42 = vmax.f32 %v1799_v14, %v1596_v40 }
 0x26b   :  { %v1600_v29 = vpop.f32.mrb[70].mxu1 }
 0x26c   :  { %v1764_v10 = vmax.f32 %v1763_v44, %v1600_v29  ;;  %v1602_v51 = vpop.f32.mrb[71].mxu1  ;;  %v1832_v29 = vshrl.u32 %v1831_v7, 7 }
 0x26d   :  { %v1801_v27 = vmax.f32 %v1800_v42, %v1602_v51  ;;  %v1830_v42 = vunpack.c.0.s8 %v1829_v16 }
 0x26f   :  { %v1606_v33 = vpop.f32.mrb[72].mxu1 }
 0x270   :  { %v1765_v4 = vmax.f32 %v1764_v10, %v1606_v33  ;;  %v1608_v21 = vpop.f32.mrb[73].mxu1  ;;  %v1833_v33 = vsub.s32 %v1830_v42, %v1832_v29 }
 0x271   :  { %v1802_v61 = vmax.f32 %v1801_v27, %v1608_v21 }
 0x273   :  { %v1612_v55 = vpop.f32.mrb[74].mxu1 }
 0x274   :  { %v1766_v12 = vmax.f32 %v1765_v4, %v1612_v55  ;;  %v1614_v41 = vpop.f32.mrb[75].mxu1  ;;  %v1911_v55 = vsub.s32 1, %v1832_v29 }
 0x275   :  { %v1803_v43 = vmax.f32 %v1802_v61, %v1614_v41  ;;  %v1907_v61 = vsub.s32 0, %v1832_v29  ;;  %v1834_v41 = vrot.slane %v1827_v20, %v1833_v33 }
 0x277   :  { %v1618_v62 = vpop.f32.mrb[76].mxu1 }
 0x278   :  { %v1767_v45 = vmax.f32 %v1766_v12, %v1618_v62  ;;  %v1620_v38 = vpop.f32.mrb[77].mxu1  ;;  %v1903_v12 = vld [vmem:[%s3198_s4] sm:$0x3]  ;;  %s2392_s4 = scalar_lea.vmem %s1931_s27, 64 }
 0x279   :  { %v1804_v48 = vmax.f32 %v1803_v43, %v1620_v38  ;;  %v1912_v38 = vrot.slane %v1903_v12, %v1911_v55  ;;  %p2393_p0 = scmp.ne.s32.totalorder %s1931_s27, %s2392_s4  ;;  %p2398_p2 = scmp.lt.s32.totalorder %s2392_s4, %s2392_s4 }
 0x27b   :  { %v1624_v22 = vpop.f32.mrb[78].mxu1  ;;  %p2399_p3 = por %p2398_p2, %p2397_p1 }
 0x27c   :  { %v1768_v56 = vmax.f32 %v1767_v45, %v1624_v22  ;;  %v1626_v17 = vpop.f32.mrb[79].mxu1  ;;  %v1908_v45 = vrot.slane %v1903_v12, %v1907_v61 }
 0x27d   :  { %v1805_v26 = vmax.f32 %v1804_v48, %v1626_v17  ;;  %p2400_p4 = pnand %p2399_p3, %p2393_p0 }
 0x27e   :  { %v1913_v17 = vcombine.low %v1908_v45, %v1912_v38 }
 0x27f   :  { %v1630_v9 = vpop.f32.mrb[80].mxu1 }
 0x280   :  { %v1769_v32 = vmax.f32 %v1768_v56, %v1630_v9  ;;  %v1632_v46 = vpop.f32.mrb[81].mxu1 }
 0x281   :  { %v1806_v49 = vmax.f32 %v1805_v26, %v1632_v46  ;;  %v1920_v26 = vrot.slane %v1913_v17, %v1833_v33 }
 0x283   :  { %v1636_v60 = vpop.f32.mrb[82].mxu1 }
 0x284   :  { %v1770_v36 = vmax.f32 %v1769_v32, %v1636_v60  ;;  %v1638_v0 = vpop.f32.mrb[83].mxu1 }
 0x285   :  { %v1807_v6 = vmax.f32 %v1806_v49, %v1638_v0 }
 0x287   :  { %v1642_v57 = vpop.f32.mrb[84].mxu1 }
 0x288   :  { %v1771_v3 = vmax.f32 %v1770_v36, %v1642_v57  ;;  %v1644_v53 = vpop.f32.mrb[85].mxu1 }
 0x289   :  { %v1808_v8 = vmax.f32 %v1807_v6, %v1644_v53 }
 0x28b   :  { %v1648_v1 = vpop.f32.mrb[86].mxu1 }
 0x28c   :  { %v1772_v18 = vmax.f32 %v1771_v3, %v1648_v1  ;;  %v1650_v13 = vpop.f32.mrb[87].mxu1 }
 0x28d   :  { %v1809_v50 = vmax.f32 %v1808_v8, %v1650_v13 }
 0x28f   :  { %v1654_v11 = vpop.f32.mrb[88].mxu1 }
 0x290   :  { %v1773_v2 = vmax.f32 %v1772_v18, %v1654_v11  ;;  %v1656_v5 = vpop.f32.mrb[89].mxu1 }
 0x291   :  { %v1810_v63 = vmax.f32 %v1809_v50, %v1656_v5 }
 0x293   :  { %v1660_v23 = vpop.f32.mrb[90].mxu1 }
 0x294   :  { %v1774_v15 = vmax.f32 %v1773_v2, %v1660_v23  ;;  %v1662_v47 = vpop.f32.mrb[91].mxu1 }
 0x295   :  { %v1811_v54 = vmax.f32 %v1810_v63, %v1662_v47 }
 0x297   :  { %v1666_v58 = vpop.f32.mrb[92].mxu1 }
 0x298   :  { %v1775_v19 = vmax.f32 %v1774_v15, %v1666_v58  ;;  %v1668_v28 = vpop.f32.mrb[93].mxu1 }
 0x299   :  { %v1812_v59 = vmax.f32 %v1811_v54, %v1668_v28 }
 0x29a   :  { %v1776_v30 = vrot.slane %v1775_v19, 4 }
 0x29b   :  { %v1813_v31 = vrot.slane %v1812_v59, 4 }
 0x29c   :  { %v1777_v25 = vmax.f32 %v1775_v19, %v1776_v30 }
 0x29d   :  { %v1814_v52 = vmax.f32 %v1812_v59, %v1813_v31 }
 0x29e   :  { %v1778_v34 = vrot.slane %v1777_v25, 2 }
 0x29f   :  { %v1815_v14 = vrot.slane %v1814_v52, 2 }
 0x2a0   :  { %v1779_v24 = vmax.f32 %v1777_v25, %v1778_v34 }
 0x2a1   :  { %v1816_v44 = vmax.f32 %v1814_v52, %v1815_v14 }
 0x2a2   :  { %v1780_v40 = vrot.slane %v1779_v24, 1 }
 0x2a3   :  { %v1817_v10 = vrot.slane %v1816_v44, 1 }
 0x2a4   :  { %v1781_v51 = vmax.f32 %v1779_v24, %v1780_v40 }
 0x2a5   :  { %v1818_v27 = vmax.f32 %v1816_v44, %v1817_v10 }
 0x2a7   :  { %v1835_v4 = vcombine.low %v1781_v51, %v1818_v27 }
 0x2a9   :  { %v1842_v21 = vrot.slane %v1835_v4, %v1833_v33 }
 0x2ab   :  { %v1847_v43 = vrot.slane %v1842_v21, 7 }
 0x2ad   :  { %v1849_v62 = vsel %vm1848_vm2, %v1847_v43, %v1834_v41 }
 0x2ae   :  { %v1851_v48 = vsel %vm1850_vm3, %v1847_v43, %v1849_v62 }
 0x2af   :  { %v1853_v22 = vsel %vm1852_vm4, %v1847_v43, %v1851_v48 }
 0x2b0   :  { %v1855_v56 = vsel %vm1854_vm5, %v1847_v43, %v1853_v22 }
 0x2b1   :  { %1857 = vst [vmem:[#allocation2] sm:$0xf] %v1855_v56 }
 0x2b8   :  { %v1902_v9 = vld [vmem:[#allocation2] sm:$0xf] }
 0x2b9   :  { %v1922_v32 = vadd.f32 %v1920_v26, %v1902_v9 }
 0x2bb   :  { %1923 = vst [vmem:[#allocation2] sm:$0xf] %v1922_v32 }
 0x2bc   :  { %2403 = shalt.err (!%p2400_p4)
}
 0x2bd   :  { %s2404_s30 = scalar_lea.hbm %s3199_s5, 64 }
 0x2be   :  { %p2405_p5 = scmp.ne.s32.totalorder %s3199_s5, %s2404_s30  ;;  %p2408_p6 = scmp.lt.u32.totalorder %s2404_s30, %s3199_s5 }
 0x2c0   :  { %p2410_p7 = pnand %p2408_p6, %p2405_p5 }
 0x2c2   :  { %2413 = shalt.err (!%p2410_p7)
}
 0x2c3   :  { %1933 = dma.vmem_to_hbm [thread:$0]  %s1931_s27, 64, %s3199_s5, [#allocation3]  }
 0x2c4   :  { %2414 = dma.done.wait [#allocation3], 64  }
 0x2c5   :  { %2415 = vsyncadd [#allocation3], 4294967232 }
 0x2c6   :  { %1937 = vsyncpa [#allocation3], 1 }

</bundles_post_ra>
